<compile_context>
chip_gen: v5e
topology: v5e:2x2
jax: 0.10.0
libtpu: 0.0.40
codegen_flags: <defaults>
</compile_context>

<pallas_src>
import math

import jax
import jax.numpy as jnp
from jax.experimental import pallas as pl
from jax.experimental.pallas import tpu as pltpu


def _patch_merge_kernel(x_ref, g_ref, b_ref, w_ref, o_ref):
    # x_ref: (tr, 2, W/2, 2C)   -- 2x2 block-row axis is dim 1
    # g_ref, b_ref: (2, 2C)     -- LayerNorm weight / bias, split by half
    # w_ref: (2, 2C, dim_out)   -- reduction weight, split by half
    # o_ref: (tr * W/2, dim_out)
    tr, _, w1, c2 = x_ref.shape
    c4 = 2 * c2
    tm = tr * w1
    inv_c4 = 1.0 / c4

    # Free Ref-level slices of the two 2x2-block rows (no 4D value load).
    xa = x_ref[:, 0, :, :].astype(jnp.float32)   # (tr, w1, 2C) = features [0, 2C)
    xb = x_ref[:, 1, :, :].astype(jnp.float32)   # (tr, w1, 2C) = features [2C, 4C)

    # LayerNorm over the (virtual) 4C feature: biased variance, eps = 1e-5.
    # Stats on the un-flattened 3D tiles -> pure axis=-1 reductions.
    mean = (jnp.sum(xa, axis=-1, keepdims=True)
            + jnp.sum(xb, axis=-1, keepdims=True)) * inv_c4
    da = xa - mean
    db = xb - mean
    var = (jnp.sum(da * da, axis=-1, keepdims=True)
           + jnp.sum(db * db, axis=-1, keepdims=True)) * inv_c4
    inv = jax.lax.rsqrt(var + 1e-5)

    g = g_ref[...].astype(jnp.float32)           # (2, 2C)
    bt = b_ref[...].astype(jnp.float32)

    wd = w_ref.dtype
    # Flatten to (tm, 2C) only on the normalized, weight-dtype data.
    ya = (da * inv * g[0:1, :] + bt[0:1, :]).astype(wd).reshape(tm, c2)
    yb = (db * inv * g[1:2, :] + bt[1:2, :]).astype(wd).reshape(tm, c2)

    # Bias-free Linear on the MXU, split over the two 2C halves
    # (mathematically == concat(ya, yb) @ W), accumulating in f32.
    acc = jnp.dot(ya, w_ref[0], preferred_element_type=jnp.float32)
    acc = acc + jnp.dot(yb, w_ref[1], preferred_element_type=jnp.float32)
    o_ref[...] = acc.astype(o_ref.dtype)


def patch_merging(x, gamma, beta, w_red, *, tokens_per_tile=None):
    """PatchMerging forward.

    x:      (B, H, W, C)   NHWC (f32 or bf16; bf16 recommended for perf)
    gamma:  (4C,)          LayerNorm weight
    beta:   (4C,)          LayerNorm bias
    w_red:  (4C, dim_out)  reduction weight (no bias; match x's dtype for bf16 MXU)
    returns (B, H/2, W/2, dim_out) in x's dtype
    """
    b, h, w, c = x.shape
    assert h % 2 == 0 and w % 2 == 0, "H and W must be even"
    c2, c4 = 2 * c, 4 * c
    dim_out = w_red.shape[1]
    assert w_red.shape[0] == c4 and gamma.shape == (c4,) and beta.shape == (c4,)

    h1, w1 = h // 2, w // 2
    r = b * h1                    # merged-token rows; each row holds w1 tokens
    n = r * w1                    # total merged tokens
    out_dtype = x.dtype

    # Free (metadata-only) reshapes; NO extra HBM pass over the activations.
    xr = x.reshape(r, 2, w1, c2)
    g2 = gamma.reshape(2, c2)
    b2 = beta.reshape(2, c2)
    w2 = w_red.reshape(2, c2, dim_out)

    x_is = jnp.dtype(x.dtype).itemsize
    w_is = jnp.dtype(w_red.dtype).itemsize
    o_is = jnp.dtype(out_dtype).itemsize

    # ---- generation-aware VMEM budgeting ------------------------------------
    try:
        vmem_cap = int(pltpu.get_tpu_info().vmem_capacity_bytes)
    except Exception:
        vmem_cap = 128 * 2**20
    small_vmem = vmem_cap <= 64 * 2**20          # v7x-class part (2 TCs, 64 MiB)
    # Headroom for compiler scratch/spills; 128 MiB parts are NOT clamped at 64.
    vmem_limit = vmem_cap - (12 * 2**20 if small_vmem else 24 * 2**20)
    vmem_limit = int(max(vmem_limit, 32 * 2**20))

    if tokens_per_tile is None:
        tokens_per_tile = 1024 if small_vmem else 2048

    # Single-buffered grid-invariant operands + small fixed overhead.
    fixed = c4 * dim_out * w_is + 2 * c4 * 4 + (1 << 20)

    def vmem_need(tr_):
        tm_ = tr_ * w1
        return (2 * tm_ * c4 * x_is            # double-buffered input tiles
                + 2 * tm_ * dim_out * o_is     # double-buffered output tiles
                + 4 * tm_ * c2 * 4             # f32 LN live set (xa/xb, da/db)
                + tm_ * c4 * w_is              # ya/yb in weight dtype
                + tm_ * dim_out * 4)           # f32 matmul accumulator

    budget = max(vmem_limit - fixed, 2 * 2**20)
    align = 8 // math.gcd(w1, 8)               # tr granularity so (tr*w1) % 8 == 0
    tr_cap = max(1, tokens_per_tile // w1)
    while tr_cap > align and vmem_need(tr_cap) > budget:
        tr_cap = max(align, tr_cap // 2)
    # Feed both v7x TensorCores (>= 2 grid steps); single-TC v5e/v6e skip this.
    if small_vmem and r >= 2 * align:
        tr_cap = min(tr_cap, max(align, r // 2))

    tr = min(tr_cap, r)
    if tr < r:
        # out block is (tr*w1, dim_out): need (tr*w1) % 8 == 0 unless tile == whole array.
        tr = min(r, max(align, (tr // align) * align))
    tm = tr * w1
    grid = (pl.cdiv(r, tr),)                   # ragged last block is masked by Pallas

    def _call(single_buffer_invariants):
        inv_kw = ({"pipeline_mode": pl.Buffered(1)}
                  if single_buffer_invariants else {})
        return pl.pallas_call(
            _patch_merge_kernel,
            out_shape=jax.ShapeDtypeStruct((n, dim_out), out_dtype),
            grid_spec=pltpu.PrefetchScalarGridSpec(
                num_scalar_prefetch=0,
                grid=grid,
                in_specs=[
                    pl.BlockSpec((tr, 2, w1, c2), lambda i: (i, 0, 0, 0)),
                    # Grid-invariant operands: constant block index -> DMA'd once;
                    # single-buffered so they don't eat VMEM twice.
                    pl.BlockSpec((2, c2), lambda i: (0, 0), **inv_kw),
                    pl.BlockSpec((2, c2), lambda i: (0, 0), **inv_kw),
                    pl.BlockSpec((2, c2, dim_out), lambda i: (0, 0, 0), **inv_kw),
                ],
                out_specs=pl.BlockSpec((tm, dim_out), lambda i: (i, 0)),
            ),
            compiler_params=pltpu.CompilerParams(
                dimension_semantics=("parallel",),
                vmem_limit_bytes=vmem_limit,
            ),
        )(xr, g2, b2, w2)

    try:
        out_flat = _call(True)
    except Exception:
        # Fallback if this JAX build rejects single-buffering (pl.Buffered(1)).
        out_flat = _call(False)

    return out_flat.reshape(b, h1, w1, dim_out)


# ----------------------------- reference ------------------------------------
def _space_to_depth_ref(x, block_size=2):
    b, h, w, c = x.shape
    h1, w1 = h // block_size, w // block_size
    x = x.reshape(b, h1, block_size, w1, block_size, c)
    x = jnp.transpose(x, (0, 1, 3, 2, 4, 5))
    return x.reshape(b, h1, w1, block_size * block_size * c)


def _reference(x, gamma, beta, w_red):
    xm = _space_to_depth_ref(x, 2)
    mean = jnp.mean(xm, axis=-1, keepdims=True)
    var = jnp.mean((xm - mean) ** 2, axis=-1, keepdims=True)
    xn = (xm - mean) / jnp.sqrt(var + 1e-5)
    y = xn * gamma + beta
    return y @ w_red


if __name__ == "__main__":
    # Small shapes consistent with the module: dim_in=4, dim_out=8.
    B, H, W, C = 2, 16, 16, 4
    dim_in, dim_out = C, 8

    key = jax.random.PRNGKey(0)
    kx, kg, kb, kw = jax.random.split(key, 4)
    x = jax.random.normal(kx, (B, H, W, C), dtype=jnp.float32)
    gamma = 1.0 + 0.1 * jax.random.normal(kg, (4 * dim_in,), dtype=jnp.float32)
    beta = 0.1 * jax.random.normal(kb, (4 * dim_in,), dtype=jnp.float32)
    w_red = jax.random.normal(kw, (4 * dim_in, dim_out), dtype=jnp.float32) * 0.1

    # f32 correctness check against the reference.
    out = jax.block_until_ready(patch_merging(x, gamma, beta, w_red))
    ref = _reference(x, gamma, beta, w_red)
    assert out.shape == (B, H // 2, W // 2, dim_out), out.shape
    assert jnp.allclose(out, ref, atol=1e-4, rtol=1e-4), "f32 mismatch vs reference"

    # bf16 end-to-end path (halved DMA bytes, bf16 MXU); loose tolerance.
    xb16 = x.astype(jnp.bfloat16)
    gb16 = gamma.astype(jnp.bfloat16)
    bb16 = beta.astype(jnp.bfloat16)
    wb16 = w_red.astype(jnp.bfloat16)
    out_bf16 = jax.block_until_ready(patch_merging(xb16, gb16, bb16, wb16))
    ref_bf16 = _reference(xb16.astype(jnp.float32), gb16.astype(jnp.float32),
                          bb16.astype(jnp.float32), wb16.astype(jnp.float32))
    assert out_bf16.dtype == jnp.bfloat16
    assert jnp.allclose(out_bf16.astype(jnp.float32), ref_bf16,
                        atol=5e-2, rtol=5e-2), "bf16 mismatch vs reference"

    print("KERNEL_OK")
</pallas_src>

<mosaic_0001>
module attributes {stable_mosaic.version = 11 : i64} {
  func.func @_patch_merge_kernel(%arg0: i32, %arg1: memref<16x2x8x8xf32, #tpu.memory_space<vmem>>, %arg2: memref<2x8xf32, #tpu.memory_space<vmem>>, %arg3: memref<2x8xf32, #tpu.memory_space<vmem>>, %arg4: memref<2x8x8xf32, #tpu.memory_space<vmem>>, %arg5: memref<128x8xf32, #tpu.memory_space<vmem>>) attributes {dimension_semantics = [#tpu.dimension_semantics<parallel>], iteration_bounds = array<i64: 1>, scalar_prefetch = 0 : i64, scratch_operands = 0 : i64, tpu.core_type = #tpu.core_type<tc>, window_params = [{transform_indices = @transform_0, window_bounds = array<i64: 16, 2, 8, 8>}, {pipeline_mode = #tpu.pipeline_mode<synchronous>, transform_indices = @transform_1, window_bounds = array<i64: 2, 8>}, {pipeline_mode = #tpu.pipeline_mode<synchronous>, transform_indices = @transform_2, window_bounds = array<i64: 2, 8>}, {pipeline_mode = #tpu.pipeline_mode<synchronous>, transform_indices = @transform_3, window_bounds = array<i64: 2, 8, 8>}, {transform_indices = @transform_4, window_bounds = array<i64: 128, 8>}]} {
    %c0 = arith.constant 0 : index
    %c0_0 = arith.constant 0 : index
    %c0_1 = arith.constant 0 : index
    %c0_2 = arith.constant 0 : index
    %0 = vector.load %arg1[%c0, %c0_0, %c0_1, %c0_2] : memref<16x2x8x8xf32, #tpu.memory_space<vmem>>, vector<16x1x8x8xf32>
    %1 = vector.shape_cast %0 : vector<16x1x8x8xf32> to vector<16x8x8xf32>
    %c0_3 = arith.constant 0 : index
    %c1 = arith.constant 1 : index
    %c0_4 = arith.constant 0 : index
    %c0_5 = arith.constant 0 : index
    %2 = vector.load %arg1[%c0_3, %c1, %c0_4, %c0_5] : memref<16x2x8x8xf32, #tpu.memory_space<vmem>>, vector<16x1x8x8xf32>
    %3 = vector.shape_cast %2 : vector<16x1x8x8xf32> to vector<16x8x8xf32>
    %cst = arith.constant dense<0.000000e+00> : vector<16x8xf32>
    %4 = vector.multi_reduction <add>, %1, %cst [2] : vector<16x8x8xf32> to vector<16x8xf32>
    %5 = vector.shape_cast %4 : vector<16x8xf32> to vector<16x8x1xf32>
    %cst_6 = arith.constant dense<0.000000e+00> : vector<16x8xf32>
    %6 = vector.multi_reduction <add>, %3, %cst_6 [2] : vector<16x8x8xf32> to vector<16x8xf32>
    %7 = vector.shape_cast %6 : vector<16x8xf32> to vector<16x8x1xf32>
    %8 = arith.addf %5, %7 : vector<16x8x1xf32>
    %cst_7 = arith.constant 6.250000e-02 : f32
    %9 = vector.broadcast %cst_7 : f32 to vector<16x8x1xf32>
    %10 = arith.mulf %8, %9 : vector<16x8x1xf32>
    %11 = vector.broadcast %10 : vector<16x8x1xf32> to vector<16x8x8xf32>
    %12 = arith.subf %1, %11 : vector<16x8x8xf32>
    %13 = vector.broadcast %10 : vector<16x8x1xf32> to vector<16x8x8xf32>
    %14 = arith.subf %3, %13 : vector<16x8x8xf32>
    %15 = arith.mulf %12, %12 : vector<16x8x8xf32>
    %cst_8 = arith.constant dense<0.000000e+00> : vector<16x8xf32>
    %16 = vector.multi_reduction <add>, %15, %cst_8 [2] : vector<16x8x8xf32> to vector<16x8xf32>
    %17 = vector.shape_cast %16 : vector<16x8xf32> to vector<16x8x1xf32>
    %18 = arith.mulf %14, %14 : vector<16x8x8xf32>
    %cst_9 = arith.constant dense<0.000000e+00> : vector<16x8xf32>
    %19 = vector.multi_reduction <add>, %18, %cst_9 [2] : vector<16x8x8xf32> to vector<16x8xf32>
    %20 = vector.shape_cast %19 : vector<16x8xf32> to vector<16x8x1xf32>
    %21 = arith.addf %17, %20 : vector<16x8x1xf32>
    %cst_10 = arith.constant 6.250000e-02 : f32
    %22 = vector.broadcast %cst_10 : f32 to vector<16x8x1xf32>
    %23 = arith.mulf %21, %22 : vector<16x8x1xf32>
    %cst_11 = arith.constant 9.99999974E-6 : f32
    %24 = vector.broadcast %cst_11 : f32 to vector<16x8x1xf32>
    %25 = arith.addf %23, %24 : vector<16x8x1xf32>
    %26 = math.rsqrt %25 : vector<16x8x1xf32>
    %c0_12 = arith.constant 0 : index
    %c0_13 = arith.constant 0 : index
    %27 = vector.load %arg2[%c0_12, %c0_13] : memref<2x8xf32, #tpu.memory_space<vmem>>, vector<2x8xf32>
    %c0_14 = arith.constant 0 : index
    %c0_15 = arith.constant 0 : index
    %28 = vector.load %arg3[%c0_14, %c0_15] : memref<2x8xf32, #tpu.memory_space<vmem>>, vector<2x8xf32>
    %29 = vector.broadcast %26 : vector<16x8x1xf32> to vector<16x8x8xf32>
    %30 = arith.mulf %12, %29 : vector<16x8x8xf32>
    %31 = vector.extract_strided_slice %27 {offsets = [0, 0], sizes = [1, 8], strides = [1, 1]} : vector<2x8xf32> to vector<1x8xf32>
    %32 = vector.shape_cast %31 : vector<1x8xf32> to vector<1x1x8xf32>
    %33 = vector.broadcast %32 : vector<1x1x8xf32> to vector<16x8x8xf32>
    %34 = arith.mulf %30, %33 : vector<16x8x8xf32>
    %35 = vector.extract_strided_slice %28 {offsets = [0, 0], sizes = [1, 8], strides = [1, 1]} : vector<2x8xf32> to vector<1x8xf32>
    %36 = vector.shape_cast %35 : vector<1x8xf32> to vector<1x1x8xf32>
    %37 = vector.broadcast %36 : vector<1x1x8xf32> to vector<16x8x8xf32>
    %38 = arith.addf %34, %37 : vector<16x8x8xf32>
    %39 = vector.shape_cast %38 : vector<16x8x8xf32> to vector<128x8xf32>
    %40 = vector.broadcast %26 : vector<16x8x1xf32> to vector<16x8x8xf32>
    %41 = arith.mulf %14, %40 : vector<16x8x8xf32>
    %42 = vector.extract_strided_slice %27 {offsets = [1, 0], sizes = [1, 8], strides = [1, 1]} : vector<2x8xf32> to vector<1x8xf32>
    %43 = vector.shape_cast %42 : vector<1x8xf32> to vector<1x1x8xf32>
    %44 = vector.broadcast %43 : vector<1x1x8xf32> to vector<16x8x8xf32>
    %45 = arith.mulf %41, %44 : vector<16x8x8xf32>
    %46 = vector.extract_strided_slice %28 {offsets = [1, 0], sizes = [1, 8], strides = [1, 1]} : vector<2x8xf32> to vector<1x8xf32>
    %47 = vector.shape_cast %46 : vector<1x8xf32> to vector<1x1x8xf32>
    %48 = vector.broadcast %47 : vector<1x1x8xf32> to vector<16x8x8xf32>
    %49 = arith.addf %45, %48 : vector<16x8x8xf32>
    %50 = vector.shape_cast %49 : vector<16x8x8xf32> to vector<128x8xf32>
    %c0_16 = arith.constant 0 : index
    %c0_17 = arith.constant 0 : index
    %c0_18 = arith.constant 0 : index
    %51 = vector.load %arg4[%c0_16, %c0_17, %c0_18] : memref<2x8x8xf32, #tpu.memory_space<vmem>>, vector<1x8x8xf32>
    %52 = vector.shape_cast %51 : vector<1x8x8xf32> to vector<8x8xf32>
    %cst_19 = arith.constant dense<0.000000e+00> : vector<128x8xf32>
    %53 = tpu.matmul %39, %52, %cst_19 {dimension_numbers = #tpu.dot_dimension_numbers<[1], [0], [0], [1], [0, 0, 1, 1], [], []>} : vector<128x8xf32>, vector<8x8xf32>, vector<128x8xf32> -> vector<128x8xf32>
    %c1_20 = arith.constant 1 : index
    %c0_21 = arith.constant 0 : index
    %c0_22 = arith.constant 0 : index
    %54 = vector.load %arg4[%c1_20, %c0_21, %c0_22] : memref<2x8x8xf32, #tpu.memory_space<vmem>>, vector<1x8x8xf32>
    %55 = vector.shape_cast %54 : vector<1x8x8xf32> to vector<8x8xf32>
    %cst_23 = arith.constant dense<0.000000e+00> : vector<128x8xf32>
    %56 = tpu.matmul %50, %55, %cst_23 {dimension_numbers = #tpu.dot_dimension_numbers<[1], [0], [0], [1], [0, 0, 1, 1], [], []>} : vector<128x8xf32>, vector<8x8xf32>, vector<128x8xf32> -> vector<128x8xf32>
    %57 = arith.addf %53, %56 : vector<128x8xf32>
    %c0_24 = arith.constant 0 : index
    %c0_25 = arith.constant 0 : index
    %58 = vector.load %arg5[%c0_24, %c0_25] : memref<128x8xf32, #tpu.memory_space<vmem>>, vector<128x8xf32>
    tpu.vector_store %arg5[%c0_24, %c0_25], %57 {strides = array<i32>} : memref<128x8xf32, #tpu.memory_space<vmem>>, vector<128x8xf32>,
    return
  }
  func.func @transform_0(%arg0: i32) -> (i32, i32, i32, i32) {
    %c0_i32 = arith.constant 0 : i32
    %c0_i32_0 = arith.constant 0 : i32
    %c0_i32_1 = arith.constant 0 : i32
    %c0_i32_2 = arith.constant 0 : i32
    return %arg0, %c0_i32, %c0_i32_0, %c0_i32_1 : i32, i32, i32, i32
  }
  func.func @transform_1(%arg0: i32) -> (i32, i32) {
    %c0_i32 = arith.constant 0 : i32
    %c0_i32_0 = arith.constant 0 : i32
    %c0_i32_1 = arith.constant 0 : i32
    return %c0_i32, %c0_i32_0 : i32, i32
  }
  func.func @transform_2(%arg0: i32) -> (i32, i32) {
    %c0_i32 = arith.constant 0 : i32
    %c0_i32_0 = arith.constant 0 : i32
    %c0_i32_1 = arith.constant 0 : i32
    return %c0_i32, %c0_i32_0 : i32, i32
  }
  func.func @transform_3(%arg0: i32) -> (i32, i32, i32) {
    %c0_i32 = arith.constant 0 : i32
    %c0_i32_0 = arith.constant 0 : i32
    %c0_i32_1 = arith.constant 0 : i32
    %c0_i32_2 = arith.constant 0 : i32
    return %c0_i32, %c0_i32_0, %c0_i32_1 : i32, i32, i32
  }
  func.func @transform_4(%arg0: i32) -> (i32, i32) {
    %c0_i32 = arith.constant 0 : i32
    %c0_i32_0 = arith.constant 0 : i32
    return %arg0, %c0_i32 : i32, i32
  }
}

module attributes {stable_mosaic.version = 11 : i64} {
  func.func @_patch_merge_kernel(%arg0: i32, %arg1: memref<16x2x8x8xf32, #tpu.memory_space<vmem>>, %arg2: memref<2x8xf32, #tpu.memory_space<vmem>>, %arg3: memref<2x8xf32, #tpu.memory_space<vmem>>, %arg4: memref<2x8x8xf32, #tpu.memory_space<vmem>>, %arg5: memref<128x8xf32, #tpu.memory_space<vmem>>) attributes {dimension_semantics = [#tpu.dimension_semantics<parallel>], iteration_bounds = array<i64: 1>, scalar_prefetch = 0 : i64, scratch_operands = 0 : i64, tpu.core_type = #tpu.core_type<tc>, window_params = [{transform_indices = @transform_0, window_bounds = array<i64: 16, 2, 8, 8>}, {pipeline_mode = #tpu.pipeline_mode<synchronous>, transform_indices = @transform_1, window_bounds = array<i64: 2, 8>}, {pipeline_mode = #tpu.pipeline_mode<synchronous>, transform_indices = @transform_2, window_bounds = array<i64: 2, 8>}, {pipeline_mode = #tpu.pipeline_mode<synchronous>, transform_indices = @transform_3, window_bounds = array<i64: 2, 8, 8>}, {transform_indices = @transform_4, window_bounds = array<i64: 128, 8>}]} {
    %c0 = arith.constant 0 : index
    %c0_0 = arith.constant 0 : index
    %c0_1 = arith.constant 0 : index
    %c0_2 = arith.constant 0 : index
    %0 = vector.load %arg1[%c0, %c0_0, %c0_1, %c0_2] : memref<16x2x8x8xf32, #tpu.memory_space<vmem>>, vector<16x1x8x8xf32>
    %1 = vector.shape_cast %0 : vector<16x1x8x8xf32> to vector<16x8x8xf32>
    %c0_3 = arith.constant 0 : index
    %c1 = arith.constant 1 : index
    %c0_4 = arith.constant 0 : index
    %c0_5 = arith.constant 0 : index
    %2 = vector.load %arg1[%c0_3, %c1, %c0_4, %c0_5] : memref<16x2x8x8xf32, #tpu.memory_space<vmem>>, vector<16x1x8x8xf32>
    %3 = vector.shape_cast %2 : vector<16x1x8x8xf32> to vector<16x8x8xf32>
    %cst = arith.constant dense<0.000000e+00> : vector<16x8xf32>
    %4 = vector.multi_reduction <add>, %1, %cst [2] : vector<16x8x8xf32> to vector<16x8xf32>
    %5 = vector.shape_cast %4 : vector<16x8xf32> to vector<16x8x1xf32>
    %cst_6 = arith.constant dense<0.000000e+00> : vector<16x8xf32>
    %6 = vector.multi_reduction <add>, %3, %cst_6 [2] : vector<16x8x8xf32> to vector<16x8xf32>
    %7 = vector.shape_cast %6 : vector<16x8xf32> to vector<16x8x1xf32>
    %8 = arith.addf %5, %7 : vector<16x8x1xf32>
    %cst_7 = arith.constant 6.250000e-02 : f32
    %9 = vector.broadcast %cst_7 : f32 to vector<16x8x1xf32>
    %10 = arith.mulf %8, %9 : vector<16x8x1xf32>
    %11 = vector.broadcast %10 : vector<16x8x1xf32> to vector<16x8x8xf32>
    %12 = arith.subf %1, %11 : vector<16x8x8xf32>
    %13 = vector.broadcast %10 : vector<16x8x1xf32> to vector<16x8x8xf32>
    %14 = arith.subf %3, %13 : vector<16x8x8xf32>
    %15 = arith.mulf %12, %12 : vector<16x8x8xf32>
    %cst_8 = arith.constant dense<0.000000e+00> : vector<16x8xf32>
    %16 = vector.multi_reduction <add>, %15, %cst_8 [2] : vector<16x8x8xf32> to vector<16x8xf32>
    %17 = vector.shape_cast %16 : vector<16x8xf32> to vector<16x8x1xf32>
    %18 = arith.mulf %14, %14 : vector<16x8x8xf32>
    %cst_9 = arith.constant dense<0.000000e+00> : vector<16x8xf32>
    %19 = vector.multi_reduction <add>, %18, %cst_9 [2] : vector<16x8x8xf32> to vector<16x8xf32>
    %20 = vector.shape_cast %19 : vector<16x8xf32> to vector<16x8x1xf32>
    %21 = arith.addf %17, %20 : vector<16x8x1xf32>
    %cst_10 = arith.constant 6.250000e-02 : f32
    %22 = vector.broadcast %cst_10 : f32 to vector<16x8x1xf32>
    %23 = arith.mulf %21, %22 : vector<16x8x1xf32>
    %cst_11 = arith.constant 9.99999974E-6 : f32
    %24 = vector.broadcast %cst_11 : f32 to vector<16x8x1xf32>
    %25 = arith.addf %23, %24 : vector<16x8x1xf32>
    %26 = math.rsqrt %25 : vector<16x8x1xf32>
    %c0_12 = arith.constant 0 : index
    %c0_13 = arith.constant 0 : index
    %27 = vector.load %arg2[%c0_12, %c0_13] : memref<2x8xf32, #tpu.memory_space<vmem>>, vector<2x8xf32>
    %c0_14 = arith.constant 0 : index
    %c0_15 = arith.constant 0 : index
    %28 = vector.load %arg3[%c0_14, %c0_15] : memref<2x8xf32, #tpu.memory_space<vmem>>, vector<2x8xf32>
    %29 = vector.broadcast %26 : vector<16x8x1xf32> to vector<16x8x8xf32>
    %30 = arith.mulf %12, %29 : vector<16x8x8xf32>
    %31 = vector.extract_strided_slice %27 {offsets = [0, 0], sizes = [1, 8], strides = [1, 1]} : vector<2x8xf32> to vector<1x8xf32>
    %32 = vector.shape_cast %31 : vector<1x8xf32> to vector<1x1x8xf32>
    %33 = vector.broadcast %32 : vector<1x1x8xf32> to vector<16x8x8xf32>
    %34 = arith.mulf %30, %33 : vector<16x8x8xf32>
    %35 = vector.extract_strided_slice %28 {offsets = [0, 0], sizes = [1, 8], strides = [1, 1]} : vector<2x8xf32> to vector<1x8xf32>
    %36 = vector.shape_cast %35 : vector<1x8xf32> to vector<1x1x8xf32>
    %37 = vector.broadcast %36 : vector<1x1x8xf32> to vector<16x8x8xf32>
    %38 = arith.addf %34, %37 : vector<16x8x8xf32>
    %39 = vector.shape_cast %38 : vector<16x8x8xf32> to vector<128x8xf32>
    %40 = vector.broadcast %26 : vector<16x8x1xf32> to vector<16x8x8xf32>
    %41 = arith.mulf %14, %40 : vector<16x8x8xf32>
    %42 = vector.extract_strided_slice %27 {offsets = [1, 0], sizes = [1, 8], strides = [1, 1]} : vector<2x8xf32> to vector<1x8xf32>
    %43 = vector.shape_cast %42 : vector<1x8xf32> to vector<1x1x8xf32>
    %44 = vector.broadcast %43 : vector<1x1x8xf32> to vector<16x8x8xf32>
    %45 = arith.mulf %41, %44 : vector<16x8x8xf32>
    %46 = vector.extract_strided_slice %28 {offsets = [1, 0], sizes = [1, 8], strides = [1, 1]} : vector<2x8xf32> to vector<1x8xf32>
    %47 = vector.shape_cast %46 : vector<1x8xf32> to vector<1x1x8xf32>
    %48 = vector.broadcast %47 : vector<1x1x8xf32> to vector<16x8x8xf32>
    %49 = arith.addf %45, %48 : vector<16x8x8xf32>
    %50 = vector.shape_cast %49 : vector<16x8x8xf32> to vector<128x8xf32>
    %c0_16 = arith.constant 0 : index
    %c0_17 = arith.constant 0 : index
    %c0_18 = arith.constant 0 : index
    %51 = vector.load %arg4[%c0_16, %c0_17, %c0_18] : memref<2x8x8xf32, #tpu.memory_space<vmem>>, vector<1x8x8xf32>
    %52 = vector.shape_cast %51 : vector<1x8x8xf32> to vector<8x8xf32>
    %cst_19 = arith.constant dense<0.000000e+00> : vector<128x8xf32>
    %53 = tpu.matmul %39, %52, %cst_19 {dimension_numbers = #tpu.dot_dimension_numbers<[1], [0], [0], [1], [0, 0, 1, 1], [], []>} : vector<128x8xf32>, vector<8x8xf32>, vector<128x8xf32> -> vector<128x8xf32>
    %c1_20 = arith.constant 1 : index
    %c0_21 = arith.constant 0 : index
    %c0_22 = arith.constant 0 : index
    %54 = vector.load %arg4[%c1_20, %c0_21, %c0_22] : memref<2x8x8xf32, #tpu.memory_space<vmem>>, vector<1x8x8xf32>
    %55 = vector.shape_cast %54 : vector<1x8x8xf32> to vector<8x8xf32>
    %cst_23 = arith.constant dense<0.000000e+00> : vector<128x8xf32>
    %56 = tpu.matmul %50, %55, %cst_23 {dimension_numbers = #tpu.dot_dimension_numbers<[1], [0], [0], [1], [0, 0, 1, 1], [], []>} : vector<128x8xf32>, vector<8x8xf32>, vector<128x8xf32> -> vector<128x8xf32>
    %57 = arith.addf %53, %56 : vector<128x8xf32>
    %c0_24 = arith.constant 0 : index
    %c0_25 = arith.constant 0 : index
    %58 = vector.load %arg5[%c0_24, %c0_25] : memref<128x8xf32, #tpu.memory_space<vmem>>, vector<128x8xf32>
    tpu.vector_store %arg5[%c0_24, %c0_25], %57 {strides = array<i32>} : memref<128x8xf32, #tpu.memory_space<vmem>>, vector<128x8xf32>,
    return
  }
  func.func @transform_0(%arg0: i32) -> (i32, i32, i32, i32) {
    %c0_i32 = arith.constant 0 : i32
    %c0_i32_0 = arith.constant 0 : i32
    %c0_i32_1 = arith.constant 0 : i32
    %c0_i32_2 = arith.constant 0 : i32
    return %arg0, %c0_i32, %c0_i32_0, %c0_i32_1 : i32, i32, i32, i32
  }
  func.func @transform_1(%arg0: i32) -> (i32, i32) {
    %c0_i32 = arith.constant 0 : i32
    %c0_i32_0 = arith.constant 0 : i32
    %c0_i32_1 = arith.constant 0 : i32
    return %c0_i32, %c0_i32_0 : i32, i32
  }
  func.func @transform_2(%arg0: i32) -> (i32, i32) {
    %c0_i32 = arith.constant 0 : i32
    %c0_i32_0 = arith.constant 0 : i32
    %c0_i32_1 = arith.constant 0 : i32
    return %c0_i32, %c0_i32_0 : i32, i32
  }
  func.func @transform_3(%arg0: i32) -> (i32, i32, i32) {
    %c0_i32 = arith.constant 0 : i32
    %c0_i32_0 = arith.constant 0 : i32
    %c0_i32_1 = arith.constant 0 : i32
    %c0_i32_2 = arith.constant 0 : i32
    return %c0_i32, %c0_i32_0, %c0_i32_1 : i32, i32, i32
  }
  func.func @transform_4(%arg0: i32) -> (i32, i32) {
    %c0_i32 = arith.constant 0 : i32
    %c0_i32_0 = arith.constant 0 : i32
    return %arg0, %c0_i32 : i32, i32
  }
}

</mosaic_0001>

<bundles_post_ra>
// kernel: tpu_custom_call.1
= control target key start
LH: loop header
LB: loop body
LE: loop exit
PB: predicated region body
PF: predicated region fallthrough
CT: control target
= control target key end

     0   :  { %vm50_vm0 = vcmask 64512   ;;  %s1703_s0 = inlined_call_operand.vmem [shape: f32[16,2,8,8], index: 0, kind: input, shape index: {}]   ;;  %s1704_s3 = inlined_call_operand.vmem [shape: f32[2,8,8], index: 3, kind: input, shape index: {}]   ;;  %s1705_s1 = inlined_call_operand.vmem [shape: f32[2,8], index: 1, kind: input, shape index: {}]   ;;  %s1706_s2 = inlined_call_operand.vmem [shape: f32[2,8], index: 2, kind: input, shape index: {}]   ;;  %s1707_s4 = inlined_call_operand.vmem [shape: f32[128,8], index: 4, kind: output, shape index: {}]  }
   0x1   :  { %v1009_v0 = vld [vmem:[%s1703_s0 + $0x90] sm:$0xff]  ;;  %v1014_v1 = vld [vmem:[%s1703_s0 + $0x80] sm:$0xff]  ;;  %v1030_v6 = vld [vmem:[%s1703_s0 + $0x98] sm:$0xff] }
   0x2   :  { %v1019_v2 = vld [vmem:[%s1703_s0] sm:$0xff]  ;;  %v78_v3 = vsel %vm50_vm0, %v1009_v0, 0.0  ;;  %v75_v4 = vsel %vm50_vm0, %v1014_v1, 0.0  ;;  %v1035_v7 = vld [vmem:[%s1703_s0 + $0x88] sm:$0xff]  ;;  %v126_v9 = vsel %vm50_vm0, %v1030_v6, 0.0  ;;  %v1051_v12 = vld [vmem:[%s1703_s0 + $0x10] sm:$0xff] }
   0x3   :  { %v51_v5 = vsel %vm50_vm0, %v1019_v2, 0.0  ;;  %79 = vadd.xlane.f32.xlu2 %v78_v3  ;;  %76 = vadd.xlane.f32.xlu0 %v75_v4  ;;  %v1040_v8 = vld [vmem:[%s1703_s0 + $0x8] sm:$0xff]  ;;  %v123_v10 = vsel %vm50_vm0, %v1035_v7, 0.0  ;;  %v1056_v13 = vld [vmem:[%s1703_s0 + $0xa0] sm:$0xff]  ;;  %v1061_v14 = vld [vmem:[%s1703_s0 + $0x18] sm:$0xff]  ;;  %v54_v15 = vsel %vm50_vm0, %v1051_v12, 0.0 }
   0x4   :  { %52 = vadd.xlane.f32.xlu1 %v51_v5  ;;  %v99_v11 = vsel %vm50_vm0, %v1040_v8, 0.0  ;;  %v81_v16 = vsel %vm50_vm0, %v1056_v13, 0.0  ;;  %v102_v17 = vsel %vm50_vm0, %v1061_v14, 0.0  ;;  %v1072_v18 = vld [vmem:[%s1703_s0 + $0xa8] sm:$0xff]  ;;  %v1082_v20 = vld [vmem:[%s1703_s0 + $0x20] sm:$0xff]  ;;  %v1093_v24 = vld [vmem:[%s1703_s0 + $0xb0] sm:$0xff] }
   0x5   :  { %v1077_v19 = vld [vmem:[%s1703_s0 + $0x28] sm:$0xff]  ;;  %v129_v21 = vsel %vm50_vm0, %v1072_v18, 0.0  ;;  %v57_v23 = vsel %vm50_vm0, %v1082_v20, 0.0  ;;  %v1098_v25 = vld [vmem:[%s1703_s0 + $0x30] sm:$0xff]  ;;  %v1103_v26 = vld [vmem:[%s1703_s0 + $0xb8] sm:$0xff]  ;;  %v84_v27 = vsel %vm50_vm0, %v1093_v24, 0.0 }
   0x6   :  { %v105_v22 = vsel %vm50_vm0, %v1077_v19, 0.0  ;;  %v60_v28 = vsel %vm50_vm0, %v1098_v25, 0.0  ;;  %v132_v29 = vsel %vm50_vm0, %v1103_v26, 0.0  ;;  %v1114_v30 = vld [vmem:[%s1703_s0 + $0x38] sm:$0xff]  ;;  %v1119_v31 = vld [vmem:[%s1703_s0 + $0xc8] sm:$0xff]  ;;  %v1124_v32 = vld [vmem:[%s1703_s0 + $0xc0] sm:$0xff] }
   0x7   :  { %v108_v33 = vsel %vm50_vm0, %v1114_v30, 0.0  ;;  %v135_v34 = vsel %vm50_vm0, %v1119_v31, 0.0  ;;  %v87_v35 = vsel %vm50_vm0, %v1124_v32, 0.0  ;;  %v1135_v36 = vld [vmem:[%s1703_s0 + $0x40] sm:$0xff]  ;;  %v1140_v37 = vld [vmem:[%s1703_s0 + $0xd0] sm:$0xff]  ;;  %v1145_v38 = vld [vmem:[%s1703_s0 + $0x48] sm:$0xff] }
   0x8   :  { %v63_v39 = vsel %vm50_vm0, %v1135_v36, 0.0  ;;  %v90_v40 = vsel %vm50_vm0, %v1140_v37, 0.0  ;;  %v111_v41 = vsel %vm50_vm0, %v1145_v38, 0.0  ;;  %v1156_v42 = vld [vmem:[%s1703_s0 + $0xd8] sm:$0xff]  ;;  %v1166_v44 = vld [vmem:[%s1703_s0 + $0x50] sm:$0xff]  ;;  %v1177_v48 = vld [vmem:[%s1703_s0 + $0xe0] sm:$0xff] }
   0x9   :  { %v1161_v43 = vld [vmem:[%s1703_s0 + $0x58] sm:$0xff]  ;;  %v138_v45 = vsel %vm50_vm0, %v1156_v42, 0.0  ;;  %v66_v47 = vsel %vm50_vm0, %v1166_v44, 0.0  ;;  %v1182_v49 = vld [vmem:[%s1703_s0 + $0x68] sm:$0xff]  ;;  %v93_v51 = vsel %vm50_vm0, %v1177_v48, 0.0  ;;  %v1198_v54 = vld [vmem:[%s1703_s0 + $0xf0] sm:$0xff] }
   0xa   :  { %v114_v46 = vsel %vm50_vm0, %v1161_v43, 0.0  ;;  %v1187_v50 = vld [vmem:[%s1703_s0 + $0xe8] sm:$0xff]  ;;  %v117_v52 = vsel %vm50_vm0, %v1182_v49, 0.0  ;;  %v1203_v55 = vld [vmem:[%s1703_s0 + $0xf8] sm:$0xff]  ;;  %v1208_v56 = vld [vmem:[%s1703_s0 + $0x60] sm:$0xff]  ;;  %v96_v57 = vsel %vm50_vm0, %v1198_v54, 0.0 }
   0xb   :  { %127 = vadd.xlane.f32.xlu2 %v126_v9  ;;  %124 = vadd.xlane.f32.xlu0 %v123_v10  ;;  %v141_v53 = vsel %vm50_vm0, %v1187_v50, 0.0  ;;  %v144_v58 = vsel %vm50_vm0, %v1203_v55, 0.0  ;;  %v69_v59 = vsel %vm50_vm0, %v1208_v56, 0.0  ;;  %v1219_v60 = vld [vmem:[%s1703_s0 + $0x70] sm:$0xff]  ;;  %v1224_v61 = vld [vmem:[%s1703_s0 + $0x78] sm:$0xff] }
   0xc   :  { %100 = vadd.xlane.f32.xlu1 %v99_v11  ;;  %v72_v62 = vsel %vm50_vm0, %v1219_v60, 0.0  ;;  %v120_v63 = vsel %vm50_vm0, %v1224_v61, 0.0 }
  0x13   :  { %55 = vadd.xlane.f32.xlu0 %v54_v15  ;;  %82 = vadd.xlane.f32.xlu2 %v81_v16 }
  0x14   :  { %103 = vadd.xlane.f32.xlu1 %v102_v17 }
  0x1b   :  { %130 = vadd.xlane.f32.xlu0 %v129_v21  ;;  %106 = vadd.xlane.f32.xlu2 %v105_v22 }
  0x1c   :  { %58 = vadd.xlane.f32.xlu1 %v57_v23 }
  0x23   :  { %85 = vadd.xlane.f32.xlu0 %v84_v27  ;;  %61 = vadd.xlane.f32.xlu2 %v60_v28 }
  0x24   :  { %133 = vadd.xlane.f32.xlu1 %v132_v29 }
  0x2b   :  { %109 = vadd.xlane.f32.xlu0 %v108_v33  ;;  %136 = vadd.xlane.f32.xlu2 %v135_v34 }
  0x2c   :  { %88 = vadd.xlane.f32.xlu1 %v87_v35 }
  0x33   :  { %64 = vadd.xlane.f32.xlu0 %v63_v39  ;;  %91 = vadd.xlane.f32.xlu2 %v90_v40 }
  0x34   :  { %112 = vadd.xlane.f32.xlu1 %v111_v41 }
  0x3b   :  { %139 = vadd.xlane.f32.xlu0 %v138_v45  ;;  %115 = vadd.xlane.f32.xlu2 %v114_v46 }
  0x3c   :  { %67 = vadd.xlane.f32.xlu1 %v66_v47 }
  0x43   :  { %94 = vadd.xlane.f32.xlu0 %v93_v51  ;;  %118 = vadd.xlane.f32.xlu2 %v117_v52 }
  0x44   :  { %142 = vadd.xlane.f32.xlu1 %v141_v53 }
  0x4b   :  { %97 = vadd.xlane.f32.xlu2 %v96_v57  ;;  %145 = vadd.xlane.f32.xlu0 %v144_v58 }
  0x4c   :  { %70 = vadd.xlane.f32.xlu1 %v69_v59 }
  0x53   :  { %73 = vadd.xlane.f32.xlu0 %v72_v62 }
  0x54   :  { %121 = vadd.xlane.f32.xlu1 %v120_v63 }
  0x76   :  { %v80_v3 = vpop.xlane.xlu2 %79  ;;  %v77_v4 = vpop.xlane.xlu0 %76 }
  0x77   :  { %v53_v5 = vpop.xlane.xlu1 %52 }
  0x7e   :  { %v128_v9 = vpop.xlane.xlu2 %127  ;;  %v125_v10 = vpop.xlane.xlu0 %124 }
  0x7f   :  { %v156_v11 = vadd.f32 %v128_v9, %v80_v3  ;;  %v155_v15 = vadd.f32 %v125_v10, %v77_v4  ;;  %v101_v16 = vpop.xlane.xlu1 %100 }
  0x80   :  { %v147_v17 = vadd.f32 %v101_v16, %v53_v5 }
  0x81   :  { %v171_v21 = vmul.f32 0.0625, %v155_v15  ;;  %v172_v22 = vmul.f32 0.0625, %v156_v11 }
  0x82   :  { %v163_v23 = vmul.f32 0.0625, %v147_v17 }
  0x83   :  { %v1231_v27 = vsub.f32 %v1014_v1, %v171_v21  ;;  %v1234_v28 = vsub.f32 %v1035_v7, %v171_v21  ;;  %v1244_v35 = vsub.f32 %v1030_v6, %v172_v22  ;;  %v1254_v46 = vsub.f32 %v1009_v0, %v172_v22 }
  0x84   :  { %v1237_v29 = vsub.f32 %v1040_v8, %v163_v23  ;;  %v1249_v7 = vsub.f32 %v1019_v2, %v163_v23 }
  0x85   :  { %v219_v33 = vmul.f32 %v1231_v27, %v1231_v27  ;;  %v283_v34 = vmul.f32 %v1234_v28, %v1234_v28  ;;  %v284_v51 = vmul.f32 %v1244_v35, %v1244_v35  ;;  %v220_v53 = vmul.f32 %v1254_v46, %v1254_v46 }
  0x86   :  { %v56_v39 = vpop.xlane.xlu0 %55  ;;  %v83_v40 = vpop.xlane.xlu2 %82  ;;  %v275_v1 = vmul.f32 %v1237_v29, %v1237_v29  ;;  %v211_v2 = vmul.f32 %v1249_v7, %v1249_v7 }
  0x87   :  { %v104_v41 = vpop.xlane.xlu1 %103  ;;  %v251_v8 = vsel %vm50_vm0, %v219_v33, 0.0  ;;  %v315_v45 = vsel %vm50_vm0, %v283_v34, 0.0  ;;  %v318_v0 = vsel %vm50_vm0, %v284_v51, 0.0  ;;  %v254_v9 = vsel %vm50_vm0, %v220_v53, 0.0 }
  0x88   :  { %v148_v47 = vadd.f32 %v104_v41, %v56_v39  ;;  %252 = vadd.xlane.f32.xlu2 %v251_v8  ;;  %316 = vadd.xlane.f32.xlu0 %v315_v45  ;;  %v291_v6 = vsel %vm50_vm0, %v275_v1, 0.0  ;;  %v227_v4 = vsel %vm50_vm0, %v211_v2, 0.0 }
  0x89   :  { %292 = vadd.xlane.f32.xlu1 %v291_v6 }
  0x8a   :  { %v164_v52 = vmul.f32 0.0625, %v148_v47 }
  0x8c   :  { %v1265_v59 = vsub.f32 %v1051_v12, %v164_v52  ;;  %v1268_v62 = vsub.f32 %v1061_v14, %v164_v52 }
  0x8e   :  { %v131_v57 = vpop.xlane.xlu0 %130  ;;  %v107_v58 = vpop.xlane.xlu2 %106  ;;  %v276_v12 = vmul.f32 %v1268_v62, %v1268_v62  ;;  %v212_v14 = vmul.f32 %v1265_v59, %v1265_v59 }
  0x8f   :  { %v157_v63 = vadd.f32 %v131_v57, %v83_v40  ;;  %v59_v3 = vpop.xlane.xlu1 %58 }
  0x90   :  { %v149_v5 = vadd.f32 %v107_v58, %v59_v3  ;;  %319 = vadd.xlane.f32.xlu2 %v318_v0  ;;  %228 = vadd.xlane.f32.xlu0 %v227_v4  ;;  %v294_v34 = vsel %vm50_vm0, %v276_v12, 0.0  ;;  %v230_v39 = vsel %vm50_vm0, %v212_v14, 0.0 }
  0x91   :  { %v173_v10 = vmul.f32 0.0625, %v157_v63  ;;  %255 = vadd.xlane.f32.xlu1 %v254_v9 }
  0x92   :  { %v165_v15 = vmul.f32 0.0625, %v149_v5 }
  0x93   :  { %v1273_v11 = vsub.f32 %v1056_v13, %v173_v10  ;;  %v1282_v17 = vsub.f32 %v1072_v18, %v173_v10 }
  0x94   :  { %v1285_v23 = vsub.f32 %v1082_v20, %v165_v15  ;;  %v1291_v40 = vsub.f32 %v1077_v19, %v165_v15 }
  0x95   :  { %v221_v16 = vmul.f32 %v1273_v11, %v1273_v11  ;;  %v285_v18 = vmul.f32 %v1282_v17, %v1282_v17 }
  0x96   :  { %v86_v21 = vpop.xlane.xlu0 %85  ;;  %v62_v22 = vpop.xlane.xlu2 %61  ;;  %v213_v20 = vmul.f32 %v1285_v23, %v1285_v23  ;;  %v277_v8 = vmul.f32 %v1291_v40, %v1291_v40 }
  0x97   :  { %v134_v13 = vpop.xlane.xlu1 %133  ;;  %v257_v33 = vsel %vm50_vm0, %v221_v16, 0.0  ;;  %v321_v6 = vsel %vm50_vm0, %v285_v18, 0.0 }
  0x98   :  { %v158_v1 = vadd.f32 %v134_v13, %v86_v21  ;;  %295 = vadd.xlane.f32.xlu0 %v294_v34  ;;  %231 = vadd.xlane.f32.xlu2 %v230_v39  ;;  %v233_v53 = vsel %vm50_vm0, %v213_v20, 0.0  ;;  %v297_v58 = vsel %vm50_vm0, %v277_v8, 0.0 }
  0x99   :  { %258 = vadd.xlane.f32.xlu1 %v257_v33 }
  0x9a   :  { %v174_v41 = vmul.f32 0.0625, %v158_v1 }
  0x9c   :  { %v1301_v19 = vsub.f32 %v1093_v24, %v174_v41  ;;  %v1304_v51 = vsub.f32 %v1103_v26, %v174_v41 }
  0x9e   :  { %v110_v45 = vpop.xlane.xlu0 %109  ;;  %v137_v47 = vpop.xlane.xlu2 %136  ;;  %v286_v24 = vmul.f32 %v1304_v51, %v1304_v51  ;;  %v222_v26 = vmul.f32 %v1301_v19, %v1301_v19 }
  0x9f   :  { %v150_v52 = vadd.f32 %v110_v45, %v62_v22  ;;  %v89_v2 = vpop.xlane.xlu1 %88 }
  0xa0   :  { %v159_v57 = vadd.f32 %v137_v47, %v89_v2  ;;  %322 = vadd.xlane.f32.xlu2 %v321_v6  ;;  %234 = vadd.xlane.f32.xlu0 %v233_v53  ;;  %v324_v14 = vsel %vm50_vm0, %v286_v24, 0.0  ;;  %v260_v16 = vsel %vm50_vm0, %v222_v26, 0.0 }
  0xa1   :  { %v166_v0 = vmul.f32 0.0625, %v150_v52  ;;  %298 = vadd.xlane.f32.xlu1 %v297_v58 }
  0xa2   :  { %v175_v3 = vmul.f32 0.0625, %v159_v57 }
  0xa3   :  { %v1309_v63 = vsub.f32 %v1098_v25, %v166_v0  ;;  %v1318_v5 = vsub.f32 %v1114_v30, %v166_v0 }
  0xa4   :  { %v1321_v15 = vsub.f32 %v1124_v32, %v175_v3  ;;  %v1327_v21 = vsub.f32 %v1119_v31, %v175_v3 }
  0xa5   :  { %v214_v4 = vmul.f32 %v1309_v63, %v1309_v63  ;;  %v278_v30 = vmul.f32 %v1318_v5, %v1318_v5 }
  0xa6   :  { %v65_v9 = vpop.xlane.xlu0 %64  ;;  %v92_v10 = vpop.xlane.xlu2 %91  ;;  %v223_v32 = vmul.f32 %v1321_v15, %v1321_v15  ;;  %v287_v33 = vmul.f32 %v1327_v21, %v1327_v21 }
  0xa7   :  { %v113_v25 = vpop.xlane.xlu1 %112  ;;  %v236_v12 = vsel %vm50_vm0, %v214_v4, 0.0  ;;  %v300_v1 = vsel %vm50_vm0, %v278_v30, 0.0 }
  0xa8   :  { %v151_v22 = vadd.f32 %v113_v25, %v65_v9  ;;  %325 = vadd.xlane.f32.xlu0 %v324_v14  ;;  %261 = vadd.xlane.f32.xlu2 %v260_v16  ;;  %v263_v8 = vsel %vm50_vm0, %v223_v32, 0.0  ;;  %v327_v47 = vsel %vm50_vm0, %v287_v33, 0.0 }
  0xa9   :  { %237 = vadd.xlane.f32.xlu1 %v236_v12 }
  0xaa   :  { %v167_v13 = vmul.f32 0.0625, %v151_v22 }
  0xac   :  { %v1337_v31 = vsub.f32 %v1135_v36, %v167_v13  ;;  %v1340_v18 = vsub.f32 %v1145_v38, %v167_v13 }
  0xae   :  { %v140_v34 = vpop.xlane.xlu0 %139  ;;  %v116_v39 = vpop.xlane.xlu2 %115  ;;  %v279_v36 = vmul.f32 %v1340_v18, %v1340_v18  ;;  %v215_v38 = vmul.f32 %v1337_v31, %v1337_v31 }
  0xaf   :  { %v160_v41 = vadd.f32 %v140_v34, %v92_v10  ;;  %v68_v20 = vpop.xlane.xlu1 %67 }
  0xb0   :  { %v152_v45 = vadd.f32 %v116_v39, %v68_v20  ;;  %301 = vadd.xlane.f32.xlu2 %v300_v1  ;;  %264 = vadd.xlane.f32.xlu0 %v263_v8  ;;  %v303_v26 = vsel %vm50_vm0, %v279_v36, 0.0  ;;  %v239_v4 = vsel %vm50_vm0, %v215_v38, 0.0 }
  0xb1   :  { %v176_v6 = vmul.f32 0.0625, %v160_v41  ;;  %328 = vadd.xlane.f32.xlu1 %v327_v47 }
  0xb2   :  { %v168_v2 = vmul.f32 0.0625, %v152_v45 }
  0xb3   :  { %v1345_v52 = vsub.f32 %v1140_v37, %v176_v6  ;;  %v1354_v57 = vsub.f32 %v1156_v42, %v176_v6 }
  0xb4   :  { %v1357_v3 = vsub.f32 %v1166_v44, %v168_v2  ;;  %v1363_v9 = vsub.f32 %v1161_v43, %v168_v2 }
  0xb5   :  { %v224_v53 = vmul.f32 %v1345_v52, %v1345_v52  ;;  %v288_v42 = vmul.f32 %v1354_v57, %v1354_v57 }
  0xb6   :  { %v95_v58 = vpop.xlane.xlu0 %94  ;;  %v119_v0 = vpop.xlane.xlu2 %118  ;;  %v216_v44 = vmul.f32 %v1357_v3, %v1357_v3  ;;  %v280_v12 = vmul.f32 %v1363_v9, %v1363_v9 }
  0xb7   :  { %v143_v37 = vpop.xlane.xlu1 %142  ;;  %v266_v24 = vsel %vm50_vm0, %v224_v53, 0.0  ;;  %v330_v14 = vsel %vm50_vm0, %v288_v42, 0.0 }
  0xb8   :  { %v161_v10 = vadd.f32 %v143_v37, %v95_v58  ;;  %304 = vadd.xlane.f32.xlu0 %v303_v26  ;;  %240 = vadd.xlane.f32.xlu2 %v239_v4  ;;  %v242_v32 = vsel %vm50_vm0, %v216_v44, 0.0  ;;  %v306_v39 = vsel %vm50_vm0, %v280_v12, 0.0  ;;  %v914_v44 = vld [vmem:[%s1704_s3 + $0x8] sm:$0xff]  ;;  %v649_v12 = vld [vmem:[%s1704_s3] sm:$0xff] }
  0xb9   :  { %267 = vadd.xlane.f32.xlu1 %v266_v24  ;;  %947 = vmatpush.msra.mxu2 %v914_v44 }
  0xba   :  { %v177_v25 = vmul.f32 0.0625, %v161_v10  ;;  %948 = vmatpush.msra.mxu3 %v649_v12  ;;  %715 = vmatpush.msra.mxu0 %v914_v44 }
  0xbb   :  { %828 = vmatpush.msra.mxu1 %v649_v12 }
  0xbc   :  { %v1373_v43 = vsub.f32 %v1177_v48, %v177_v25  ;;  %v1376_v30 = vsub.f32 %v1187_v50, %v177_v25 }
  0xbe   :  { %v98_v16 = vpop.xlane.xlu2 %97  ;;  %v146_v22 = vpop.xlane.xlu0 %145  ;;  %v289_v20 = vmul.f32 %v1376_v30, %v1376_v30  ;;  %v225_v48 = vmul.f32 %v1373_v43, %v1373_v43 }
  0xbf   :  { %v71_v13 = vpop.xlane.xlu1 %70  ;;  %v162_v33 = vadd.f32 %v146_v22, %v98_v16 }
  0xc0   :  { %v153_v34 = vadd.f32 %v119_v0, %v71_v13  ;;  %331 = vadd.xlane.f32.xlu2 %v330_v14  ;;  %243 = vadd.xlane.f32.xlu0 %v242_v32  ;;  %v333_v36 = vsel %vm50_vm0, %v289_v20, 0.0  ;;  %v269_v38 = vsel %vm50_vm0, %v225_v48, 0.0 }
  0xc1   :  { %307 = vadd.xlane.f32.xlu1 %v306_v39  ;;  %v178_v1 = vmul.f32 0.0625, %v162_v33 }
  0xc2   :  { %v169_v41 = vmul.f32 0.0625, %v153_v34 }
  0xc3   :  { %v1388_v8 = vsub.f32 %v1198_v54, %v178_v1  ;;  %v1391_v45 = vsub.f32 %v1203_v55, %v178_v1 }
  0xc4   :  { %v1385_v50 = vsub.f32 %v1208_v56, %v169_v41  ;;  %v1396_v2 = vsub.f32 %v1182_v49, %v169_v41 }
  0xc5   :  { %v226_v55 = vmul.f32 %v1388_v8, %v1388_v8  ;;  %v290_v0 = vmul.f32 %v1391_v45, %v1391_v45 }
  0xc6   :  { %v217_v47 = vmul.f32 %v1385_v50, %v1385_v50  ;;  %v74_v6 = vpop.xlane.xlu0 %73  ;;  %v281_v49 = vmul.f32 %v1396_v2, %v1396_v2 }
  0xc7   :  { %v122_v53 = vpop.xlane.xlu1 %121  ;;  %v272_v26 = vsel %vm50_vm0, %v226_v55, 0.0  ;;  %v336_v4 = vsel %vm50_vm0, %v290_v0, 0.0 }
  0xc8   :  { %334 = vadd.xlane.f32.xlu0 %v333_v36  ;;  %270 = vadd.xlane.f32.xlu2 %v269_v38  ;;  %v245_v54 = vsel %vm50_vm0, %v217_v47, 0.0  ;;  %v154_v56 = vadd.f32 %v122_v53, %v74_v6  ;;  %v309_v10 = vsel %vm50_vm0, %v281_v49, 0.0 }
  0xc9   :  { %246 = vadd.xlane.f32.xlu1 %v245_v54 }
  0xca   :  { %v170_v58 = vmul.f32 0.0625, %v154_v56 }
  0xcc   :  { %v1408_v37 = vsub.f32 %v1219_v60, %v170_v58  ;;  %v1411_v24 = vsub.f32 %v1224_v61, %v170_v58 }
  0xce   :  { %v282_v42 = vmul.f32 %v1411_v24, %v1411_v24  ;;  %v218_v25 = vmul.f32 %v1408_v37, %v1408_v37 }
  0xd0   :  { %273 = vadd.xlane.f32.xlu0 %v272_v26  ;;  %310 = vadd.xlane.f32.xlu2 %v309_v10  ;;  %v312_v60 = vsel %vm50_vm0, %v282_v42, 0.0  ;;  %v248_v61 = vsel %vm50_vm0, %v218_v25, 0.0  ;;  %v547_v10 = vld [vmem:[%s1705_s1] sm:$0x3] }
  0xd1   :  { %337 = vadd.xlane.f32.xlu1 %v336_v4 }
  0xd8   :  { %313 = vadd.xlane.f32.xlu0 %v312_v60  ;;  %249 = vadd.xlane.f32.xlu2 %v248_v61  ;;  %v548_v60 = vld [vmem:[%s1706_s2] sm:$0x3] }
  0xfb   :  { %v253_v14 = vpop.xlane.xlu2 %252  ;;  %v317_v16 = vpop.xlane.xlu0 %316 }
  0xfc   :  { %v347_v22 = vadd.f32 %v317_v16, %v253_v14  ;;  %v293_v13 = vpop.xlane.xlu1 %292  ;;  %v1441_v16 = vperm.slane %v547_v10, 1 }
  0xfe   :  { %v363_v32 = vmul.f32 0.0625, %v347_v22  ;;  %v1443_v22 = vperm.slane %v547_v10, 0 }
 0x100   :  { %v379_v33 = vadd.f32 1e-05, %v363_v32 }
 0x102   :  { %949 = vrsqrt.f32 %v379_v33  ;;  %vm473_vm2 = vweird.f32 %v379_v33 }
 0x103   :  { %v320_v34 = vpop.xlane.xlu2 %319  ;;  %v229_v39 = vpop.xlane.xlu0 %228 }
 0x104   :  { %v339_v1 = vadd.f32 %v293_v13, %v229_v39  ;;  %v256_v41 = vpop.xlane.xlu1 %255 }
 0x105   :  { %v348_v20 = vadd.f32 %v320_v34, %v256_v41  ;;  %v1447_v41 = vperm.slane %v548_v60, 0 }
 0x106   :  { %v355_v48 = vmul.f32 0.0625, %v339_v1  ;;  %v1445_v1 = vperm.slane %v548_v60, 1 }
 0x107   :  { %v364_v47 = vmul.f32 0.0625, %v348_v20 }
 0x108   :  { %v950_v6 = vpop.eup %949  ;;  %v371_v36 = vadd.f32 1e-05, %v355_v48 }
 0x109   :  { %v468_v38 = vmul.f32 %v950_v6, %v379_v33  ;;  %v1428_v53 = vadd.f32 1e-05, %v364_v47  ;;  %vm474_vm1 = vweird.f32 %v950_v6 }
 0x10a   :  { %951 = vrsqrt.f32 %v371_v36  ;;  %vm475_vm3 = vmor %vm473_vm2, %vm474_vm1  ;;  %vm393_vm6 = vweird.f32 %v371_v36 }
 0x10b   :  { %v469_v54 = vmul.f32 %v950_v6, %v468_v38  ;;  %953 = vrsqrt.f32 %v1428_v53  ;;  %v296_v56 = vpop.xlane.xlu0 %295  ;;  %v232_v55 = vpop.xlane.xlu2 %231  ;;  %vm483_vm8 = vweird.f32 %v1428_v53 }
 0x10c   :  { %v340_v58 = vadd.f32 %v296_v56, %v232_v55  ;;  %v259_v0 = vpop.xlane.xlu1 %258 }
 0x10d   :  { %v470_v49 = vmul.f32 0.5, %v469_v54 }
 0x10e   :  { %v356_v26 = vmul.f32 0.0625, %v340_v58 }
 0x10f   :  { %v471_v4 = vsub.f32 1.5, %v470_v49 }
 0x110   :  { %v952_v42 = vpop.eup %951  ;;  %v1434_v25 = vadd.f32 1e-05, %v356_v26 }
 0x111   :  { %v954_v61 = vpop.eup %953  ;;  %v472_v44 = vmul.f32 %v950_v6, %v471_v4  ;;  %v388_v12 = vmul.f32 %v952_v42, %v371_v36  ;;  %vm394_vm4 = vweird.f32 %v952_v42 }
 0x112   :  { %v478_v14 = vmul.f32 %v954_v61, %v1428_v53  ;;  %955 = vrsqrt.f32 %v1434_v25  ;;  %vm484_vm5 = vweird.f32 %v954_v61  ;;  %vm395_vm7 = vmor %vm393_vm6, %vm394_vm4  ;;  %vm403_vm11 = vweird.f32 %v1434_v25 }
 0x113   :  { %v389_v13 = vmul.f32 %v952_v42, %v388_v12  ;;  %v323_v32 = vpop.xlane.xlu2 %322  ;;  %v235_v34 = vpop.xlane.xlu0 %234  ;;  %v476_v39 = vsel %vm475_vm3, %v950_v6, %v472_v44  ;;  %vm485_vm9 = vmor %vm483_vm8, %vm484_vm5 }
 0x114   :  { %v479_v20 = vmul.f32 %v954_v61, %v478_v14  ;;  %v349_v33 = vadd.f32 %v323_v32, %v259_v0  ;;  %v299_v48 = vpop.xlane.xlu1 %298  ;;  %v607_v47 = vmul.f32 %v476_v39, %v1234_v28  ;;  %v557_v38 = vmul.f32 %v476_v39, %v1231_v27 }
 0x115   :  { %v390_v54 = vmul.f32 0.5, %v389_v13  ;;  %v341_v56 = vadd.f32 %v299_v48, %v235_v34 }
 0x116   :  { %v480_v55 = vmul.f32 0.5, %v479_v20  ;;  %v365_v58 = vmul.f32 0.0625, %v349_v33  ;;  %v624_v49 = vmul.f32 %v1441_v16, %v607_v47  ;;  %v574_v26 = vmul.f32 %v1443_v22, %v557_v38 }
 0x117   :  { %v391_v6 = vsub.f32 1.5, %v390_v54  ;;  %v357_v4 = vmul.f32 0.0625, %v341_v56 }
 0x118   :  { %v956_v10 = vpop.eup %955  ;;  %v481_v60 = vsub.f32 1.5, %v480_v55  ;;  %v1453_v0 = vadd.f32 1e-05, %v365_v58  ;;  %v641_v28 = vadd.f32 %v1445_v1, %v624_v49  ;;  %v591_v27 = vadd.f32 %v1447_v41, %v574_v26 }
 0x119   :  { %v392_v44 = vmul.f32 %v952_v42, %v391_v6  ;;  %v398_v12 = vmul.f32 %v956_v10, %v1434_v25  ;;  %v1458_v14 = vadd.f32 1e-05, %v357_v4  ;;  %vm404_vm10 = vweird.f32 %v956_v10 }
 0x11a   :  { %v482_v13 = vmul.f32 %v954_v61, %v481_v60  ;;  %957 = vrsqrt.f32 %v1453_v0  ;;  %923 = vmatmul.msk.f32.vlgmr.msra.gmra.mxu2 %vm50_vm0, %v641_v28  ;;  %939 = vmatmul.msk.f32.vlgmr.msra.gmra.mxu3 %vm50_vm0, %v591_v27  ;;  %vm405_vm12 = vmor %vm403_vm11, %vm404_vm10  ;;  %vm493_vm15 = vweird.f32 %v1453_v0 }
 0x11b   :  { %v399_v32 = vmul.f32 %v956_v10, %v398_v12  ;;  %959 = vrsqrt.f32 %v1458_v14  ;;  %v326_v36 = vpop.xlane.xlu0 %325  ;;  %v262_v34 = vpop.xlane.xlu2 %261  ;;  %v396_v39 = vsel %vm395_vm7, %v952_v42, %v392_v44  ;;  %vm413_vm2 = vweird.f32 %v1458_v14 }
 0x11c   :  { %v350_v20 = vadd.f32 %v326_v36, %v262_v34  ;;  %v238_v33 = vpop.xlane.xlu1 %237  ;;  %v599_v48 = vmul.f32 %v396_v39, %v1237_v29  ;;  %v486_v47 = vsel %vm485_vm9, %v954_v61, %v482_v13  ;;  %v549_v53 = vmul.f32 %v396_v39, %v1249_v7 }
 0x11d   :  { %v400_v38 = vmul.f32 0.5, %v399_v32  ;;  %v608_v54 = vmul.f32 %v486_v47, %v1244_v35  ;;  %v558_v56 = vmul.f32 %v486_v47, %v1254_v46 }
 0x11e   :  { %v366_v55 = vmul.f32 0.0625, %v350_v20  ;;  %v616_v58 = vmul.f32 %v1441_v16, %v599_v48  ;;  %v566_v49 = vmul.f32 %v1443_v22, %v549_v53 }
 0x11f   :  { %v401_v26 = vsub.f32 1.5, %v400_v38  ;;  %v625_v42 = vmul.f32 %v1441_v16, %v608_v54  ;;  %v575_v6 = vmul.f32 %v1443_v22, %v558_v56 }
 0x120   :  { %v958_v29 = vpop.eup %957  ;;  %v1474_v61 = vadd.f32 1e-05, %v366_v55  ;;  %v633_v7 = vadd.f32 %v1445_v1, %v616_v58  ;;  %v583_v35 = vadd.f32 %v1447_v41, %v566_v49 }
 0x121   :  { %v960_v4 = vpop.eup %959  ;;  %v402_v46 = vmul.f32 %v956_v10, %v401_v26  ;;  %v488_v60 = vmul.f32 %v958_v29, %v1453_v0  ;;  %v642_v28 = vadd.f32 %v1445_v1, %v625_v42  ;;  %v592_v12 = vadd.f32 %v1447_v41, %v575_v6 }
 0x122   :  { %v408_v27 = vmul.f32 %v960_v4, %v1458_v14  ;;  %961 = vrsqrt.f32 %v1474_v61  ;;  %915 = vmatmul.msk.f32.vlgmr.msra.gmra.mxu0 %vm50_vm0, %v633_v7  ;;  %931 = vmatmul.msk.f32.vlgmr.msra.gmra.mxu1 %vm50_vm0, %v583_v35  ;;  %vm494_vm13 = vweird.f32 %v958_v29  ;;  %vm414_vm14 = vweird.f32 %v960_v4 }
 0x123   :  { %v489_v44 = vmul.f32 %v958_v29, %v488_v60  ;;  %924 = vmatmul.msk.f32.gmra.mxu2 %vm50_vm0, %v642_v28  ;;  %v302_v13 = vpop.xlane.xlu2 %301  ;;  %v265_v25 = vpop.xlane.xlu0 %264  ;;  %v406_v32 = vsel %vm405_vm12, %v956_v10, %v402_v46  ;;  %940 = vmatmul.msk.f32.gmra.mxu3 %vm50_vm0, %v592_v12  ;;  %vm495_vm1 = vmor %vm493_vm15, %vm494_vm13  ;;  %vm503_vm5 = vweird.f32 %v1474_v61 }
 0x124   :  { %v409_v36 = vmul.f32 %v960_v4, %v408_v27  ;;  %v342_v34 = vadd.f32 %v302_v13, %v238_v33  ;;  %v329_v39 = vpop.xlane.xlu1 %328  ;;  %v600_v20 = vmul.f32 %v406_v32, %v1268_v62  ;;  %v550_v48 = vmul.f32 %v406_v32, %v1265_v59  ;;  %vm415_vm3 = vmor %vm413_vm2, %vm414_vm14 }
 0x125   :  { %v490_v47 = vmul.f32 0.5, %v489_v44  ;;  %v351_v53 = vadd.f32 %v329_v39, %v265_v25 }
 0x126   :  { %v410_v38 = vmul.f32 0.5, %v409_v36  ;;  %v358_v54 = vmul.f32 0.0625, %v342_v34  ;;  %v617_v56 = vmul.f32 %v1441_v16, %v600_v20  ;;  %v567_v55 = vmul.f32 %v1443_v22, %v550_v48 }
 0x127   :  { %v491_v58 = vsub.f32 1.5, %v490_v47  ;;  %v367_v10 = vmul.f32 0.0625, %v351_v53 }
 0x128   :  { %v962_v33 = vpop.eup %961  ;;  %v411_v49 = vsub.f32 1.5, %v410_v38  ;;  %v1492_v26 = vadd.f32 1e-05, %v358_v54  ;;  %v634_v59 = vadd.f32 %v1445_v1, %v617_v56  ;;  %v584_v62 = vadd.f32 %v1447_v41, %v567_v55 }
 0x129   :  { %v492_v42 = vmul.f32 %v958_v29, %v491_v58  ;;  %v498_v6 = vmul.f32 %v962_v33, %v1474_v61  ;;  %v1498_v7 = vadd.f32 1e-05, %v367_v10  ;;  %vm504_vm4 = vweird.f32 %v962_v33 }
 0x12a   :  { %v412_v35 = vmul.f32 %v960_v4, %v411_v49  ;;  %963 = vrsqrt.f32 %v1492_v26  ;;  %916 = vmatmul.msk.f32.gmra.mxu0 %vm50_vm0, %v634_v59  ;;  %932 = vmatmul.msk.f32.gmra.mxu1 %vm50_vm0, %v584_v62  ;;  %vm505_vm6 = vmor %vm503_vm5, %vm504_vm4  ;;  %vm423_vm9 = vweird.f32 %v1492_v26 }
 0x12b   :  { %v499_v46 = vmul.f32 %v962_v33, %v498_v6  ;;  %965 = vrsqrt.f32 %v1498_v7  ;;  %v305_v0 = vpop.xlane.xlu0 %304  ;;  %v241_v60 = vpop.xlane.xlu2 %240  ;;  %v496_v28 = vsel %vm495_vm1, %v958_v29, %v492_v42  ;;  %vm513_vm11 = vweird.f32 %v1498_v7 }
 0x12c   :  { %v343_v27 = vadd.f32 %v305_v0, %v241_v60  ;;  %v268_v44 = vpop.xlane.xlu1 %267  ;;  %v416_v12 = vsel %vm415_vm3, %v960_v4, %v412_v35  ;;  %v609_v13 = vmul.f32 %v496_v28, %v1282_v17  ;;  %v559_v14 = vmul.f32 %v496_v28, %v1273_v11 }
 0x12d   :  { %v500_v25 = vmul.f32 0.5, %v499_v46  ;;  %v601_v32 = vmul.f32 %v416_v12, %v1291_v40  ;;  %v551_v36 = vmul.f32 %v416_v12, %v1285_v23 }
 0x12e   :  { %v359_v34 = vmul.f32 0.0625, %v343_v27  ;;  %v626_v39 = vmul.f32 %v1441_v16, %v609_v13  ;;  %v576_v20 = vmul.f32 %v1443_v22, %v559_v14 }
 0x12f   :  { %v501_v48 = vsub.f32 1.5, %v500_v25  ;;  %v618_v29 = vmul.f32 %v1441_v16, %v601_v32  ;;  %v568_v4 = vmul.f32 %v1443_v22, %v551_v36 }
 0x130   :  { %v964_v47 = vpop.eup %963  ;;  %v1514_v17 = vadd.f32 1e-05, %v359_v34  ;;  %v643_v11 = vadd.f32 %v1445_v1, %v626_v39  ;;  %v593_v40 = vadd.f32 %v1447_v41, %v576_v20 }
 0x131   :  { %v966_v53 = vpop.eup %965  ;;  %v502_v23 = vmul.f32 %v962_v33, %v501_v48  ;;  %v418_v38 = vmul.f32 %v964_v47, %v1492_v26  ;;  %v635_v54 = vadd.f32 %v1445_v1, %v618_v29  ;;  %v585_v58 = vadd.f32 %v1447_v41, %v568_v4 }
 0x132   :  { %v508_v56 = vmul.f32 %v966_v53, %v1498_v7  ;;  %967 = vrsqrt.f32 %v1514_v17  ;;  %925 = vmatmul.msk.f32.gmra.mxu2 %vm50_vm0, %v643_v11  ;;  %941 = vmatmul.msk.f32.gmra.mxu3 %vm50_vm0, %v593_v40  ;;  %vm424_vm7 = vweird.f32 %v964_v47  ;;  %vm514_vm8 = vweird.f32 %v966_v53 }
 0x133   :  { %v419_v55 = vmul.f32 %v964_v47, %v418_v38  ;;  %917 = vmatmul.msk.f32.gmra.mxu0 %vm50_vm0, %v635_v54  ;;  %v332_v10 = vpop.xlane.xlu2 %331  ;;  %v244_v61 = vpop.xlane.xlu0 %243  ;;  %v506_v49 = vsel %vm505_vm6, %v962_v33, %v502_v23  ;;  %933 = vmatmul.msk.f32.gmra.mxu1 %vm50_vm0, %v585_v58  ;;  %vm425_vm10 = vmor %vm423_vm9, %vm424_vm7  ;;  %vm433_vm14 = vweird.f32 %v1514_v17 }
 0x134   :  { %v509_v59 = vmul.f32 %v966_v53, %v508_v56  ;;  %v352_v62 = vadd.f32 %v332_v10, %v268_v44  ;;  %v308_v42 = vpop.xlane.xlu1 %307  ;;  %v610_v6 = vmul.f32 %v506_v49, %v1304_v51  ;;  %v560_v35 = vmul.f32 %v506_v49, %v1301_v19  ;;  %vm515_vm12 = vmor %vm513_vm11, %vm514_vm8 }
 0x135   :  { %v420_v46 = vmul.f32 0.5, %v419_v55  ;;  %v344_v0 = vadd.f32 %v308_v42, %v244_v61 }
 0x136   :  { %v510_v60 = vmul.f32 0.5, %v509_v59  ;;  %v368_v28 = vmul.f32 0.0625, %v352_v62  ;;  %v627_v27 = vmul.f32 %v1441_v16, %v610_v6  ;;  %v577_v12 = vmul.f32 %v1443_v22, %v560_v35 }
 0x137   :  { %v421_v13 = vsub.f32 1.5, %v420_v46  ;;  %v360_v33 = vmul.f32 0.0625, %v344_v0 }
 0x138   :  { %v968_v44 = vpop.eup %967  ;;  %v511_v14 = vsub.f32 1.5, %v510_v60  ;;  %v1532_v25 = vadd.f32 1e-05, %v368_v28  ;;  %v644_v19 = vadd.f32 %v1445_v1, %v627_v27  ;;  %v594_v51 = vadd.f32 %v1447_v41, %v577_v12 }
 0x139   :  { %v422_v32 = vmul.f32 %v964_v47, %v421_v13  ;;  %v428_v36 = vmul.f32 %v968_v44, %v1514_v17  ;;  %v1538_v34 = vadd.f32 1e-05, %v360_v33  ;;  %vm434_vm13 = vweird.f32 %v968_v44 }
 0x13a   :  { %v512_v39 = vmul.f32 %v966_v53, %v511_v14  ;;  %969 = vrsqrt.f32 %v1532_v25  ;;  %926 = vmatmul.msk.f32.gmra.mxu2 %vm50_vm0, %v644_v19  ;;  %942 = vmatmul.msk.f32.gmra.mxu3 %vm50_vm0, %v594_v51  ;;  %vm435_vm15 = vmor %vm433_vm14, %vm434_vm13  ;;  %vm523_vm3 = vweird.f32 %v1532_v25 }
 0x13b   :  { %v429_v20 = vmul.f32 %v968_v44, %v428_v36  ;;  %971 = vrsqrt.f32 %v1538_v34  ;;  %v335_v26 = vpop.xlane.xlu0 %334  ;;  %v271_v48 = vpop.xlane.xlu2 %270  ;;  %v426_v29 = vsel %vm425_vm10, %v964_v47, %v422_v32  ;;  %vm443_vm5 = vweird.f32 %v1538_v34 }
 0x13c   :  { %v353_v4 = vadd.f32 %v335_v26, %v271_v48  ;;  %v247_v11 = vpop.xlane.xlu1 %246  ;;  %v602_v40 = vmul.f32 %v426_v29, %v1318_v5  ;;  %v516_v23 = vsel %vm515_vm12, %v966_v53, %v512_v39  ;;  %v552_v7 = vmul.f32 %v426_v29, %v1309_v63 }
 0x13d   :  { %v430_v38 = vmul.f32 0.5, %v429_v20  ;;  %v611_v54 = vmul.f32 %v516_v23, %v1327_v21  ;;  %v561_v56 = vmul.f32 %v516_v23, %v1321_v15 }
 0x13e   :  { %v369_v55 = vmul.f32 0.0625, %v353_v4  ;;  %v619_v58 = vmul.f32 %v1441_v16, %v602_v40  ;;  %v569_v10 = vmul.f32 %v1443_v22, %v552_v7 }
 0x13f   :  { %v431_v61 = vsub.f32 1.5, %v430_v38  ;;  %v628_v47 = vmul.f32 %v1441_v16, %v611_v54  ;;  %v578_v49 = vmul.f32 %v1443_v22, %v561_v56 }
 0x140   :  { %v970_v5 = vpop.eup %969  ;;  %v1554_v53 = vadd.f32 1e-05, %v369_v55  ;;  %v636_v63 = vadd.f32 %v1445_v1, %v619_v58  ;;  %v586_v21 = vadd.f32 %v1447_v41, %v569_v10 }
 0x141   :  { %v972_v59 = vpop.eup %971  ;;  %v432_v15 = vmul.f32 %v968_v44, %v431_v61  ;;  %v518_v62 = vmul.f32 %v970_v5, %v1532_v25  ;;  %v645_v42 = vadd.f32 %v1445_v1, %v628_v47  ;;  %v595_v46 = vadd.f32 %v1447_v41, %v578_v49 }
 0x142   :  { %v438_v6 = vmul.f32 %v972_v59, %v1538_v34  ;;  %973 = vrsqrt.f32 %v1554_v53  ;;  %918 = vmatmul.msk.f32.gmra.mxu0 %vm50_vm0, %v636_v63  ;;  %934 = vmatmul.msk.f32.gmra.mxu1 %vm50_vm0, %v586_v21  ;;  %vm524_vm1 = vweird.f32 %v970_v5  ;;  %vm444_vm2 = vweird.f32 %v972_v59 }
 0x143   :  { %v519_v35 = vmul.f32 %v970_v5, %v518_v62  ;;  %927 = vmatmul.msk.f32.gmra.mxu2 %vm50_vm0, %v645_v42  ;;  %v274_v0 = vpop.xlane.xlu0 %273  ;;  %v311_v17 = vpop.xlane.xlu2 %310  ;;  %v436_v60 = vsel %vm435_vm15, %v968_v44, %v432_v15  ;;  %943 = vmatmul.msk.f32.gmra.mxu3 %vm50_vm0, %v595_v46  ;;  %vm525_vm4 = vmor %vm523_vm3, %vm524_vm1  ;;  %vm533_vm8 = vweird.f32 %v1554_v53 }
 0x144   :  { %v439_v28 = vmul.f32 %v972_v59, %v438_v6  ;;  %v345_v27 = vadd.f32 %v311_v17, %v247_v11  ;;  %v338_v12 = vpop.xlane.xlu1 %337  ;;  %v603_v13 = vmul.f32 %v436_v60, %v1340_v18  ;;  %v553_v33 = vmul.f32 %v436_v60, %v1337_v31  ;;  %vm445_vm6 = vmor %vm443_vm5, %vm444_vm2 }
 0x145   :  { %v520_v14 = vmul.f32 0.5, %v519_v35  ;;  %v354_v19 = vadd.f32 %v338_v12, %v274_v0 }
 0x146   :  { %v440_v51 = vmul.f32 0.5, %v439_v28  ;;  %v361_v32 = vmul.f32 0.0625, %v345_v27  ;;  %v620_v36 = vmul.f32 %v1441_v16, %v603_v13  ;;  %v570_v39 = vmul.f32 %v1443_v22, %v553_v33 }
 0x147   :  { %v521_v20 = vsub.f32 1.5, %v520_v14  ;;  %v370_v44 = vmul.f32 0.0625, %v354_v19 }
 0x148   :  { %v974_v26 = vpop.eup %973  ;;  %v441_v48 = vsub.f32 1.5, %v440_v51  ;;  %v1572_v29 = vadd.f32 1e-05, %v361_v32  ;;  %v637_v31 = vadd.f32 %v1445_v1, %v620_v36  ;;  %v587_v18 = vadd.f32 %v1447_v41, %v570_v39 }
 0x149   :  { %v522_v4 = vmul.f32 %v970_v5, %v521_v20  ;;  %v528_v11 = vmul.f32 %v974_v26, %v1554_v53  ;;  %v1578_v40 = vadd.f32 1e-05, %v370_v44  ;;  %vm534_vm7 = vweird.f32 %v974_v26 }
 0x14a   :  { %v442_v23 = vmul.f32 %v972_v59, %v441_v48  ;;  %975 = vrsqrt.f32 %v1572_v29  ;;  %919 = vmatmul.msk.f32.gmra.mxu0 %vm50_vm0, %v637_v31  ;;  %935 = vmatmul.msk.f32.gmra.mxu1 %vm50_vm0, %v587_v18  ;;  %vm535_vm9 = vmor %vm533_vm8, %vm534_vm7  ;;  %vm453_vm12 = vweird.f32 %v1572_v29 }
 0x14b   :  { %v529_v7 = vmul.f32 %v974_v26, %v528_v11  ;;  %977 = vrsqrt.f32 %v1578_v40  ;;  %v314_v25 = vpop.xlane.xlu0 %313  ;;  %v250_v38 = vpop.xlane.xlu2 %249  ;;  %v526_v54 = vsel %vm525_vm4, %v970_v5, %v522_v4  ;;  %vm543_vm14 = vweird.f32 %v1578_v40 }
 0x14c   :  { %v346_v56 = vadd.f32 %v314_v25, %v250_v38  ;;  %v446_v55 = vsel %vm445_vm6, %v972_v59, %v442_v23  ;;  %v612_v58 = vmul.f32 %v526_v54, %v1354_v57  ;;  %v562_v34 = vmul.f32 %v526_v54, %v1345_v52 }
 0x14d   :  { %v530_v10 = vmul.f32 0.5, %v529_v7  ;;  %v604_v61 = vmul.f32 %v446_v55, %v1363_v9  ;;  %v554_v47 = vmul.f32 %v446_v55, %v1357_v3 }
 0x14e   :  { %v362_v49 = vmul.f32 0.0625, %v346_v56  ;;  %v629_v63 = vmul.f32 %v1441_v16, %v612_v58  ;;  %v579_v21 = vmul.f32 %v1443_v22, %v562_v34 }
 0x14f   :  { %v531_v15 = vsub.f32 1.5, %v530_v10  ;;  %v621_v5 = vmul.f32 %v1441_v16, %v604_v61  ;;  %v571_v59 = vmul.f32 %v1443_v22, %v554_v47 }
 0x150   :  { %v976_v62 = vpop.eup %975  ;;  %v378_v57 = vadd.f32 1e-05, %v362_v49  ;;  %v646_v52 = vadd.f32 %v1445_v1, %v629_v63  ;;  %v596_v42 = vadd.f32 %v1447_v41, %v579_v21 }
 0x151   :  { %v978_v9 = vpop.eup %977  ;;  %v532_v6 = vmul.f32 %v974_v26, %v531_v15  ;;  %v448_v3 = vmul.f32 %v976_v62, %v1572_v29  ;;  %v638_v35 = vadd.f32 %v1445_v1, %v621_v5  ;;  %v588_v17 = vadd.f32 %v1447_v41, %v571_v59 }
 0x152   :  { %v538_v46 = vmul.f32 %v978_v9, %v1578_v40  ;;  %979 = vrsqrt.f32 %v378_v57  ;;  %928 = vmatmul.msk.f32.gmra.mxu2 %vm50_vm0, %v646_v52  ;;  %944 = vmatmul.msk.f32.gmra.mxu3 %vm50_vm0, %v596_v42  ;;  %vm454_vm10 = vweird.f32 %v976_v62  ;;  %vm544_vm11 = vweird.f32 %v978_v9 }
 0x153   :  { %v449_v0 = vmul.f32 %v976_v62, %v448_v3  ;;  %920 = vmatmul.msk.f32.gmra.mxu0 %vm50_vm0, %v638_v35  ;;  %v536_v60 = vsel %vm535_vm9, %v974_v26, %v532_v6  ;;  %936 = vmatmul.msk.f32.gmra.mxu1 %vm50_vm0, %v588_v17  ;;  %vm455_vm13 = vmor %vm453_vm12, %vm454_vm10  ;;  %vm463_vm2 = vweird.f32 %v378_v57 }
 0x154   :  { %v539_v28 = vmul.f32 %v978_v9, %v538_v46  ;;  %v613_v53 = vmul.f32 %v536_v60, %v1376_v30  ;;  %v563_v27 = vmul.f32 %v536_v60, %v1373_v43  ;;  %vm545_vm15 = vmor %vm543_vm14, %vm544_vm11 }
 0x155   :  { %v450_v12 = vmul.f32 0.5, %v449_v0 }
 0x156   :  { %v540_v13 = vmul.f32 0.5, %v539_v28  ;;  %v630_v33 = vmul.f32 %v1441_v16, %v613_v53  ;;  %v580_v14 = vmul.f32 %v1443_v22, %v563_v27 }
 0x157   :  { %v451_v19 = vsub.f32 1.5, %v450_v12 }
 0x158   :  { %v980_v51 = vpop.eup %979  ;;  %v541_v32 = vsub.f32 1.5, %v540_v13  ;;  %v647_v36 = vadd.f32 %v1445_v1, %v630_v33  ;;  %v597_v39 = vadd.f32 %v1447_v41, %v580_v14 }
 0x159   :  { %v452_v30 = vmul.f32 %v976_v62, %v451_v19  ;;  %v458_v43 = vmul.f32 %v980_v51, %v378_v57  ;;  %vm464_vm1 = vweird.f32 %v980_v51 }
 0x15a   :  { %v542_v20 = vmul.f32 %v978_v9, %v541_v32  ;;  %929 = vmatmul.msk.f32.gmra.mxu2 %vm50_vm0, %v647_v36  ;;  %945 = vmatmul.msk.f32.gmra.mxu3 %vm50_vm0, %v597_v39  ;;  %vm465_vm3 = vmor %vm463_vm2, %vm464_vm1 }
 0x15b   :  { %v459_v44 = vmul.f32 %v980_v51, %v458_v43  ;;  %v456_v26 = vsel %vm455_vm13, %v976_v62, %v452_v30 }
 0x15c   :  { %v605_v48 = vmul.f32 %v456_v26, %v1396_v2  ;;  %v546_v31 = vsel %vm545_vm15, %v978_v9, %v542_v20  ;;  %v555_v18 = vmul.f32 %v456_v26, %v1385_v50 }
 0x15d   :  { %v460_v4 = vmul.f32 0.5, %v459_v44  ;;  %v614_v29 = vmul.f32 %v546_v31, %v1391_v45  ;;  %v564_v11 = vmul.f32 %v546_v31, %v1388_v8 }
 0x15e   :  { %v622_v23 = vmul.f32 %v1441_v16, %v605_v48  ;;  %v572_v40 = vmul.f32 %v1443_v22, %v555_v18 }
 0x15f   :  { %v461_v7 = vsub.f32 1.5, %v460_v4  ;;  %v631_v25 = vmul.f32 %v1441_v16, %v614_v29  ;;  %v581_v38 = vmul.f32 %v1443_v22, %v564_v11 }
 0x160   :  { %v639_v2 = vadd.f32 %v1445_v1, %v622_v23  ;;  %v589_v54 = vadd.f32 %v1447_v41, %v572_v40 }
 0x161   :  { %v462_v50 = vmul.f32 %v980_v51, %v461_v7  ;;  %v648_v45 = vadd.f32 %v1445_v1, %v631_v25  ;;  %v598_v8 = vadd.f32 %v1447_v41, %v581_v38 }
 0x162   :  { %921 = vmatmul.msk.f32.gmra.mxu0 %vm50_vm0, %v639_v2  ;;  %937 = vmatmul.msk.f32.gmra.mxu1 %vm50_vm0, %v589_v54 }
 0x163   :  { %930 = vmatmul.msk.f32.gmra.mxu2 %vm50_vm0, %v648_v45  ;;  %946 = vmatmul.msk.f32.gmra.mxu3 %vm50_vm0, %v598_v8  ;;  %v466_v56 = vsel %vm465_vm3, %v980_v51, %v462_v50 }
 0x164   :  { %v606_v55 = vmul.f32 %v466_v56, %v1411_v24  ;;  %v556_v58 = vmul.f32 %v466_v56, %v1408_v37 }
 0x166   :  { %v623_v34 = vmul.f32 %v1441_v16, %v606_v55  ;;  %v573_v10 = vmul.f32 %v1443_v22, %v556_v58 }
 0x168   :  { %v640_v61 = vadd.f32 %v1445_v1, %v623_v34  ;;  %v590_v47 = vadd.f32 %v1447_v41, %v573_v10 }
 0x16a   :  { %922 = vmatmul.msk.f32.gmra.mxu0 %vm50_vm0, %v640_v61  ;;  %938 = vmatmul.msk.f32.gmra.mxu1 %vm50_vm0, %v590_v47 }
 0x19d   :  { %v741_v49 = vpop.f32.mrf.mxu2  ;;  %v854_v63 = vpop.f32.mrf.mxu3 }
 0x19e   :  { %v855_v21 = vadd.f32 %v854_v63, %v741_v49 }
 0x19f   :  { %v717_v15 = vpop.f32.mrf.mxu0  ;;  %v830_v5 = vpop.f32.mrf.mxu1 }
 0x1a0   :  { %886 = vst.msk [vmem:[%s1707_s4 + $0x40] sm:$0xff] %vm50_vm0, %v855_v21  ;;  %v831_v37 = vadd.f32 %v830_v5, %v717_v15 }
 0x1a2   :  { %878 = vst.msk [vmem:[%s1707_s4] sm:$0xff] %vm50_vm0, %v831_v37 }
 0x1a6   :  { %v744_v24 = vpop.f32.mrf.mxu2  ;;  %v857_v1 = vpop.f32.mrf.mxu3 }
 0x1a7   :  { %v720_v16 = vpop.f32.mrf.mxu0  ;;  %v833_v22 = vpop.f32.mrf.mxu1  ;;  %v858_v59 = vadd.f32 %v857_v1, %v744_v24 }
 0x1a8   :  { %v834_v41 = vadd.f32 %v833_v22, %v720_v16 }
 0x1a9   :  { %887 = vst.msk [vmem:[%s1707_s4 + $0x48] sm:$0xff] %vm50_vm0, %v858_v59 }
 0x1aa   :  { %879 = vst.msk [vmem:[%s1707_s4 + $0x8] sm:$0xff] %vm50_vm0, %v834_v41 }
 0x1b0   :  { %v723_v62 = vpop.f32.mrf.mxu0  ;;  %v836_v57 = vpop.f32.mrf.mxu1 }
 0x1b1   :  { %v837_v52 = vadd.f32 %v836_v57, %v723_v62 }
 0x1b3   :  { %880 = vst.msk [vmem:[%s1707_s4 + $0x10] sm:$0xff] %vm50_vm0, %v837_v52 }
 0x1b5   :  { %v747_v42 = vpop.f32.mrf.mxu2  ;;  %v860_v9 = vpop.f32.mrf.mxu3 }
 0x1b6   :  { %v861_v6 = vadd.f32 %v860_v9, %v747_v42 }
 0x1b8   :  { %888 = vst.msk [vmem:[%s1707_s4 + $0x50] sm:$0xff] %vm50_vm0, %v861_v6 }
 0x1bd   :  { %v750_v3 = vpop.f32.mrf.mxu2  ;;  %v863_v35 = vpop.f32.mrf.mxu3 }
 0x1be   :  { %v864_v46 = vadd.f32 %v863_v35, %v750_v3 }
 0x1bf   :  { %v726_v0 = vpop.f32.mrf.mxu0  ;;  %v839_v17 = vpop.f32.mrf.mxu1 }
 0x1c0   :  { %889 = vst.msk [vmem:[%s1707_s4 + $0x58] sm:$0xff] %vm50_vm0, %v864_v46  ;;  %v840_v60 = vadd.f32 %v839_v17, %v726_v0 }
 0x1c2   :  { %881 = vst.msk [vmem:[%s1707_s4 + $0x18] sm:$0xff] %vm50_vm0, %v840_v60 }
 0x1c6   :  { %v753_v28 = vpop.f32.mrf.mxu2  ;;  %v866_v12 = vpop.f32.mrf.mxu3 }
 0x1c7   :  { %v729_v53 = vpop.f32.mrf.mxu0  ;;  %v842_v27 = vpop.f32.mrf.mxu1  ;;  %v867_v33 = vadd.f32 %v866_v12, %v753_v28 }
 0x1c8   :  { %v843_v13 = vadd.f32 %v842_v27, %v729_v53 }
 0x1c9   :  { %890 = vst.msk [vmem:[%s1707_s4 + $0x60] sm:$0xff] %vm50_vm0, %v867_v33 }
 0x1ca   :  { %882 = vst.msk [vmem:[%s1707_s4 + $0x20] sm:$0xff] %vm50_vm0, %v843_v13 }
 0x1d0   :  { %v732_v14 = vpop.f32.mrf.mxu0  ;;  %v845_v19 = vpop.f32.mrf.mxu1 }
 0x1d1   :  { %v846_v51 = vadd.f32 %v845_v19, %v732_v14 }
 0x1d3   :  { %883 = vst.msk [vmem:[%s1707_s4 + $0x28] sm:$0xff] %vm50_vm0, %v846_v51 }
 0x1d5   :  { %v756_v32 = vpop.f32.mrf.mxu2  ;;  %v869_v36 = vpop.f32.mrf.mxu3 }
 0x1d6   :  { %v870_v39 = vadd.f32 %v869_v36, %v756_v32 }
 0x1d8   :  { %891 = vst.msk [vmem:[%s1707_s4 + $0x68] sm:$0xff] %vm50_vm0, %v870_v39 }
 0x1dd   :  { %v759_v30 = vpop.f32.mrf.mxu2  ;;  %v872_v43 = vpop.f32.mrf.mxu3 }
 0x1de   :  { %v873_v20 = vadd.f32 %v872_v43, %v759_v30 }
 0x1df   :  { %v735_v44 = vpop.f32.mrf.mxu0  ;;  %v848_v26 = vpop.f32.mrf.mxu1 }
 0x1e0   :  { %892 = vst.msk [vmem:[%s1707_s4 + $0x70] sm:$0xff] %vm50_vm0, %v873_v20  ;;  %v849_v48 = vadd.f32 %v848_v26, %v735_v44 }
 0x1e2   :  { %884 = vst.msk [vmem:[%s1707_s4 + $0x30] sm:$0xff] %vm50_vm0, %v849_v48 }
 0x1e6   :  { %v762_v31 = vpop.f32.mrf.mxu2  ;;  %v875_v18 = vpop.f32.mrf.mxu3 }
 0x1e7   :  { %v876_v4 = vadd.f32 %v875_v18, %v762_v31  ;;  %v738_v29 = vpop.f32.mrf.mxu0  ;;  %v851_v11 = vpop.f32.mrf.mxu1 }
 0x1e8   :  { %v852_v23 = vadd.f32 %v851_v11, %v738_v29 }
 0x1e9   :  { %893 = vst.msk [vmem:[%s1707_s4 + $0x78] sm:$0xff] %vm50_vm0, %v876_v4 }
 0x1ea   :  { %885 = vst.msk [vmem:[%s1707_s4 + $0x38] sm:$0xff] %vm50_vm0, %v852_v23 }

// kernel: tpu_custom_call.1
= control target key start
LH: loop header
LB: loop body
LE: loop exit
PB: predicated region body
PF: predicated region fallthrough
CT: control target
= control target key end

     0   :  { %vm50_vm0 = vcmask 64512   ;;  %s1703_s0 = inlined_call_operand.vmem [shape: f32[16,2,8,8], index: 0, kind: input, shape index: {}]   ;;  %s1704_s3 = inlined_call_operand.vmem [shape: f32[2,8,8], index: 3, kind: input, shape index: {}]   ;;  %s1705_s1 = inlined_call_operand.vmem [shape: f32[2,8], index: 1, kind: input, shape index: {}]   ;;  %s1706_s2 = inlined_call_operand.vmem [shape: f32[2,8], index: 2, kind: input, shape index: {}]   ;;  %s1707_s4 = inlined_call_operand.vmem [shape: f32[128,8], index: 4, kind: output, shape index: {}]  }
   0x1   :  { %v1009_v0 = vld [vmem:[%s1703_s0 + $0x90] sm:$0xff]  ;;  %v1014_v1 = vld [vmem:[%s1703_s0 + $0x80] sm:$0xff]  ;;  %v1030_v6 = vld [vmem:[%s1703_s0 + $0x98] sm:$0xff] }
   0x2   :  { %v1019_v2 = vld [vmem:[%s1703_s0] sm:$0xff]  ;;  %v78_v3 = vsel %vm50_vm0, %v1009_v0, 0.0  ;;  %v75_v4 = vsel %vm50_vm0, %v1014_v1, 0.0  ;;  %v1035_v7 = vld [vmem:[%s1703_s0 + $0x88] sm:$0xff]  ;;  %v126_v9 = vsel %vm50_vm0, %v1030_v6, 0.0  ;;  %v1051_v12 = vld [vmem:[%s1703_s0 + $0x10] sm:$0xff] }
   0x3   :  { %v51_v5 = vsel %vm50_vm0, %v1019_v2, 0.0  ;;  %79 = vadd.xlane.f32.xlu2 %v78_v3  ;;  %76 = vadd.xlane.f32.xlu0 %v75_v4  ;;  %v1040_v8 = vld [vmem:[%s1703_s0 + $0x8] sm:$0xff]  ;;  %v123_v10 = vsel %vm50_vm0, %v1035_v7, 0.0  ;;  %v1056_v13 = vld [vmem:[%s1703_s0 + $0xa0] sm:$0xff]  ;;  %v1061_v14 = vld [vmem:[%s1703_s0 + $0x18] sm:$0xff]  ;;  %v54_v15 = vsel %vm50_vm0, %v1051_v12, 0.0 }
   0x4   :  { %52 = vadd.xlane.f32.xlu1 %v51_v5  ;;  %v99_v11 = vsel %vm50_vm0, %v1040_v8, 0.0  ;;  %v81_v16 = vsel %vm50_vm0, %v1056_v13, 0.0  ;;  %v102_v17 = vsel %vm50_vm0, %v1061_v14, 0.0  ;;  %v1072_v18 = vld [vmem:[%s1703_s0 + $0xa8] sm:$0xff]  ;;  %v1082_v20 = vld [vmem:[%s1703_s0 + $0x20] sm:$0xff]  ;;  %v1093_v24 = vld [vmem:[%s1703_s0 + $0xb0] sm:$0xff] }
   0x5   :  { %v1077_v19 = vld [vmem:[%s1703_s0 + $0x28] sm:$0xff]  ;;  %v129_v21 = vsel %vm50_vm0, %v1072_v18, 0.0  ;;  %v57_v23 = vsel %vm50_vm0, %v1082_v20, 0.0  ;;  %v1098_v25 = vld [vmem:[%s1703_s0 + $0x30] sm:$0xff]  ;;  %v1103_v26 = vld [vmem:[%s1703_s0 + $0xb8] sm:$0xff]  ;;  %v84_v27 = vsel %vm50_vm0, %v1093_v24, 0.0 }
   0x6   :  { %v105_v22 = vsel %vm50_vm0, %v1077_v19, 0.0  ;;  %v60_v28 = vsel %vm50_vm0, %v1098_v25, 0.0  ;;  %v132_v29 = vsel %vm50_vm0, %v1103_v26, 0.0  ;;  %v1114_v30 = vld [vmem:[%s1703_s0 + $0x38] sm:$0xff]  ;;  %v1119_v31 = vld [vmem:[%s1703_s0 + $0xc8] sm:$0xff]  ;;  %v1124_v32 = vld [vmem:[%s1703_s0 + $0xc0] sm:$0xff] }
   0x7   :  { %v108_v33 = vsel %vm50_vm0, %v1114_v30, 0.0  ;;  %v135_v34 = vsel %vm50_vm0, %v1119_v31, 0.0  ;;  %v87_v35 = vsel %vm50_vm0, %v1124_v32, 0.0  ;;  %v1135_v36 = vld [vmem:[%s1703_s0 + $0x40] sm:$0xff]  ;;  %v1140_v37 = vld [vmem:[%s1703_s0 + $0xd0] sm:$0xff]  ;;  %v1145_v38 = vld [vmem:[%s1703_s0 + $0x48] sm:$0xff] }
   0x8   :  { %v63_v39 = vsel %vm50_vm0, %v1135_v36, 0.0  ;;  %v90_v40 = vsel %vm50_vm0, %v1140_v37, 0.0  ;;  %v111_v41 = vsel %vm50_vm0, %v1145_v38, 0.0  ;;  %v1156_v42 = vld [vmem:[%s1703_s0 + $0xd8] sm:$0xff]  ;;  %v1166_v44 = vld [vmem:[%s1703_s0 + $0x50] sm:$0xff]  ;;  %v1177_v48 = vld [vmem:[%s1703_s0 + $0xe0] sm:$0xff] }
   0x9   :  { %v1161_v43 = vld [vmem:[%s1703_s0 + $0x58] sm:$0xff]  ;;  %v138_v45 = vsel %vm50_vm0, %v1156_v42, 0.0  ;;  %v66_v47 = vsel %vm50_vm0, %v1166_v44, 0.0  ;;  %v1182_v49 = vld [vmem:[%s1703_s0 + $0x68] sm:$0xff]  ;;  %v93_v51 = vsel %vm50_vm0, %v1177_v48, 0.0  ;;  %v1198_v54 = vld [vmem:[%s1703_s0 + $0xf0] sm:$0xff] }
   0xa   :  { %v114_v46 = vsel %vm50_vm0, %v1161_v43, 0.0  ;;  %v1187_v50 = vld [vmem:[%s1703_s0 + $0xe8] sm:$0xff]  ;;  %v117_v52 = vsel %vm50_vm0, %v1182_v49, 0.0  ;;  %v1203_v55 = vld [vmem:[%s1703_s0 + $0xf8] sm:$0xff]  ;;  %v1208_v56 = vld [vmem:[%s1703_s0 + $0x60] sm:$0xff]  ;;  %v96_v57 = vsel %vm50_vm0, %v1198_v54, 0.0 }
   0xb   :  { %127 = vadd.xlane.f32.xlu2 %v126_v9  ;;  %124 = vadd.xlane.f32.xlu0 %v123_v10  ;;  %v141_v53 = vsel %vm50_vm0, %v1187_v50, 0.0  ;;  %v144_v58 = vsel %vm50_vm0, %v1203_v55, 0.0  ;;  %v69_v59 = vsel %vm50_vm0, %v1208_v56, 0.0  ;;  %v1219_v60 = vld [vmem:[%s1703_s0 + $0x70] sm:$0xff]  ;;  %v1224_v61 = vld [vmem:[%s1703_s0 + $0x78] sm:$0xff] }
   0xc   :  { %100 = vadd.xlane.f32.xlu1 %v99_v11  ;;  %v72_v62 = vsel %vm50_vm0, %v1219_v60, 0.0  ;;  %v120_v63 = vsel %vm50_vm0, %v1224_v61, 0.0 }
  0x13   :  { %55 = vadd.xlane.f32.xlu0 %v54_v15  ;;  %82 = vadd.xlane.f32.xlu2 %v81_v16 }
  0x14   :  { %103 = vadd.xlane.f32.xlu1 %v102_v17 }
  0x1b   :  { %130 = vadd.xlane.f32.xlu0 %v129_v21  ;;  %106 = vadd.xlane.f32.xlu2 %v105_v22 }
  0x1c   :  { %58 = vadd.xlane.f32.xlu1 %v57_v23 }
  0x23   :  { %85 = vadd.xlane.f32.xlu0 %v84_v27  ;;  %61 = vadd.xlane.f32.xlu2 %v60_v28 }
  0x24   :  { %133 = vadd.xlane.f32.xlu1 %v132_v29 }
  0x2b   :  { %109 = vadd.xlane.f32.xlu0 %v108_v33  ;;  %136 = vadd.xlane.f32.xlu2 %v135_v34 }
  0x2c   :  { %88 = vadd.xlane.f32.xlu1 %v87_v35 }
  0x33   :  { %64 = vadd.xlane.f32.xlu0 %v63_v39  ;;  %91 = vadd.xlane.f32.xlu2 %v90_v40 }
  0x34   :  { %112 = vadd.xlane.f32.xlu1 %v111_v41 }
  0x3b   :  { %139 = vadd.xlane.f32.xlu0 %v138_v45  ;;  %115 = vadd.xlane.f32.xlu2 %v114_v46 }
  0x3c   :  { %67 = vadd.xlane.f32.xlu1 %v66_v47 }
  0x43   :  { %94 = vadd.xlane.f32.xlu0 %v93_v51  ;;  %118 = vadd.xlane.f32.xlu2 %v117_v52 }
  0x44   :  { %142 = vadd.xlane.f32.xlu1 %v141_v53 }
  0x4b   :  { %97 = vadd.xlane.f32.xlu2 %v96_v57  ;;  %145 = vadd.xlane.f32.xlu0 %v144_v58 }
  0x4c   :  { %70 = vadd.xlane.f32.xlu1 %v69_v59 }
  0x53   :  { %73 = vadd.xlane.f32.xlu0 %v72_v62 }
  0x54   :  { %121 = vadd.xlane.f32.xlu1 %v120_v63 }
  0x76   :  { %v80_v3 = vpop.xlane.xlu2 %79  ;;  %v77_v4 = vpop.xlane.xlu0 %76 }
  0x77   :  { %v53_v5 = vpop.xlane.xlu1 %52 }
  0x7e   :  { %v128_v9 = vpop.xlane.xlu2 %127  ;;  %v125_v10 = vpop.xlane.xlu0 %124 }
  0x7f   :  { %v156_v11 = vadd.f32 %v128_v9, %v80_v3  ;;  %v155_v15 = vadd.f32 %v125_v10, %v77_v4  ;;  %v101_v16 = vpop.xlane.xlu1 %100 }
  0x80   :  { %v147_v17 = vadd.f32 %v101_v16, %v53_v5 }
  0x81   :  { %v171_v21 = vmul.f32 0.0625, %v155_v15  ;;  %v172_v22 = vmul.f32 0.0625, %v156_v11 }
  0x82   :  { %v163_v23 = vmul.f32 0.0625, %v147_v17 }
  0x83   :  { %v1231_v27 = vsub.f32 %v1014_v1, %v171_v21  ;;  %v1234_v28 = vsub.f32 %v1035_v7, %v171_v21  ;;  %v1244_v35 = vsub.f32 %v1030_v6, %v172_v22  ;;  %v1254_v46 = vsub.f32 %v1009_v0, %v172_v22 }
  0x84   :  { %v1237_v29 = vsub.f32 %v1040_v8, %v163_v23  ;;  %v1249_v7 = vsub.f32 %v1019_v2, %v163_v23 }
  0x85   :  { %v219_v33 = vmul.f32 %v1231_v27, %v1231_v27  ;;  %v283_v34 = vmul.f32 %v1234_v28, %v1234_v28  ;;  %v284_v51 = vmul.f32 %v1244_v35, %v1244_v35  ;;  %v220_v53 = vmul.f32 %v1254_v46, %v1254_v46 }
  0x86   :  { %v56_v39 = vpop.xlane.xlu0 %55  ;;  %v83_v40 = vpop.xlane.xlu2 %82  ;;  %v275_v1 = vmul.f32 %v1237_v29, %v1237_v29  ;;  %v211_v2 = vmul.f32 %v1249_v7, %v1249_v7 }
  0x87   :  { %v104_v41 = vpop.xlane.xlu1 %103  ;;  %v251_v8 = vsel %vm50_vm0, %v219_v33, 0.0  ;;  %v315_v45 = vsel %vm50_vm0, %v283_v34, 0.0  ;;  %v318_v0 = vsel %vm50_vm0, %v284_v51, 0.0  ;;  %v254_v9 = vsel %vm50_vm0, %v220_v53, 0.0 }
  0x88   :  { %v148_v47 = vadd.f32 %v104_v41, %v56_v39  ;;  %252 = vadd.xlane.f32.xlu2 %v251_v8  ;;  %316 = vadd.xlane.f32.xlu0 %v315_v45  ;;  %v291_v6 = vsel %vm50_vm0, %v275_v1, 0.0  ;;  %v227_v4 = vsel %vm50_vm0, %v211_v2, 0.0 }
  0x89   :  { %292 = vadd.xlane.f32.xlu1 %v291_v6 }
  0x8a   :  { %v164_v52 = vmul.f32 0.0625, %v148_v47 }
  0x8c   :  { %v1265_v59 = vsub.f32 %v1051_v12, %v164_v52  ;;  %v1268_v62 = vsub.f32 %v1061_v14, %v164_v52 }
  0x8e   :  { %v131_v57 = vpop.xlane.xlu0 %130  ;;  %v107_v58 = vpop.xlane.xlu2 %106  ;;  %v276_v12 = vmul.f32 %v1268_v62, %v1268_v62  ;;  %v212_v14 = vmul.f32 %v1265_v59, %v1265_v59 }
  0x8f   :  { %v157_v63 = vadd.f32 %v131_v57, %v83_v40  ;;  %v59_v3 = vpop.xlane.xlu1 %58 }
  0x90   :  { %v149_v5 = vadd.f32 %v107_v58, %v59_v3  ;;  %319 = vadd.xlane.f32.xlu2 %v318_v0  ;;  %228 = vadd.xlane.f32.xlu0 %v227_v4  ;;  %v294_v34 = vsel %vm50_vm0, %v276_v12, 0.0  ;;  %v230_v39 = vsel %vm50_vm0, %v212_v14, 0.0 }
  0x91   :  { %v173_v10 = vmul.f32 0.0625, %v157_v63  ;;  %255 = vadd.xlane.f32.xlu1 %v254_v9 }
  0x92   :  { %v165_v15 = vmul.f32 0.0625, %v149_v5 }
  0x93   :  { %v1273_v11 = vsub.f32 %v1056_v13, %v173_v10  ;;  %v1282_v17 = vsub.f32 %v1072_v18, %v173_v10 }
  0x94   :  { %v1285_v23 = vsub.f32 %v1082_v20, %v165_v15  ;;  %v1291_v40 = vsub.f32 %v1077_v19, %v165_v15 }
  0x95   :  { %v221_v16 = vmul.f32 %v1273_v11, %v1273_v11  ;;  %v285_v18 = vmul.f32 %v1282_v17, %v1282_v17 }
  0x96   :  { %v86_v21 = vpop.xlane.xlu0 %85  ;;  %v62_v22 = vpop.xlane.xlu2 %61  ;;  %v213_v20 = vmul.f32 %v1285_v23, %v1285_v23  ;;  %v277_v8 = vmul.f32 %v1291_v40, %v1291_v40 }
  0x97   :  { %v134_v13 = vpop.xlane.xlu1 %133  ;;  %v257_v33 = vsel %vm50_vm0, %v221_v16, 0.0  ;;  %v321_v6 = vsel %vm50_vm0, %v285_v18, 0.0 }
  0x98   :  { %v158_v1 = vadd.f32 %v134_v13, %v86_v21  ;;  %295 = vadd.xlane.f32.xlu0 %v294_v34  ;;  %231 = vadd.xlane.f32.xlu2 %v230_v39  ;;  %v233_v53 = vsel %vm50_vm0, %v213_v20, 0.0  ;;  %v297_v58 = vsel %vm50_vm0, %v277_v8, 0.0 }
  0x99   :  { %258 = vadd.xlane.f32.xlu1 %v257_v33 }
  0x9a   :  { %v174_v41 = vmul.f32 0.0625, %v158_v1 }
  0x9c   :  { %v1301_v19 = vsub.f32 %v1093_v24, %v174_v41  ;;  %v1304_v51 = vsub.f32 %v1103_v26, %v174_v41 }
  0x9e   :  { %v110_v45 = vpop.xlane.xlu0 %109  ;;  %v137_v47 = vpop.xlane.xlu2 %136  ;;  %v286_v24 = vmul.f32 %v1304_v51, %v1304_v51  ;;  %v222_v26 = vmul.f32 %v1301_v19, %v1301_v19 }
  0x9f   :  { %v150_v52 = vadd.f32 %v110_v45, %v62_v22  ;;  %v89_v2 = vpop.xlane.xlu1 %88 }
  0xa0   :  { %v159_v57 = vadd.f32 %v137_v47, %v89_v2  ;;  %322 = vadd.xlane.f32.xlu2 %v321_v6  ;;  %234 = vadd.xlane.f32.xlu0 %v233_v53  ;;  %v324_v14 = vsel %vm50_vm0, %v286_v24, 0.0  ;;  %v260_v16 = vsel %vm50_vm0, %v222_v26, 0.0 }
  0xa1   :  { %v166_v0 = vmul.f32 0.0625, %v150_v52  ;;  %298 = vadd.xlane.f32.xlu1 %v297_v58 }
  0xa2   :  { %v175_v3 = vmul.f32 0.0625, %v159_v57 }
  0xa3   :  { %v1309_v63 = vsub.f32 %v1098_v25, %v166_v0  ;;  %v1318_v5 = vsub.f32 %v1114_v30, %v166_v0 }
  0xa4   :  { %v1321_v15 = vsub.f32 %v1124_v32, %v175_v3  ;;  %v1327_v21 = vsub.f32 %v1119_v31, %v175_v3 }
  0xa5   :  { %v214_v4 = vmul.f32 %v1309_v63, %v1309_v63  ;;  %v278_v30 = vmul.f32 %v1318_v5, %v1318_v5 }
  0xa6   :  { %v65_v9 = vpop.xlane.xlu0 %64  ;;  %v92_v10 = vpop.xlane.xlu2 %91  ;;  %v223_v32 = vmul.f32 %v1321_v15, %v1321_v15  ;;  %v287_v33 = vmul.f32 %v1327_v21, %v1327_v21 }
  0xa7   :  { %v113_v25 = vpop.xlane.xlu1 %112  ;;  %v236_v12 = vsel %vm50_vm0, %v214_v4, 0.0  ;;  %v300_v1 = vsel %vm50_vm0, %v278_v30, 0.0 }
  0xa8   :  { %v151_v22 = vadd.f32 %v113_v25, %v65_v9  ;;  %325 = vadd.xlane.f32.xlu0 %v324_v14  ;;  %261 = vadd.xlane.f32.xlu2 %v260_v16  ;;  %v263_v8 = vsel %vm50_vm0, %v223_v32, 0.0  ;;  %v327_v47 = vsel %vm50_vm0, %v287_v33, 0.0 }
  0xa9   :  { %237 = vadd.xlane.f32.xlu1 %v236_v12 }
  0xaa   :  { %v167_v13 = vmul.f32 0.0625, %v151_v22 }
  0xac   :  { %v1337_v31 = vsub.f32 %v1135_v36, %v167_v13  ;;  %v1340_v18 = vsub.f32 %v1145_v38, %v167_v13 }
  0xae   :  { %v140_v34 = vpop.xlane.xlu0 %139  ;;  %v116_v39 = vpop.xlane.xlu2 %115  ;;  %v279_v36 = vmul.f32 %v1340_v18, %v1340_v18  ;;  %v215_v38 = vmul.f32 %v1337_v31, %v1337_v31 }
  0xaf   :  { %v160_v41 = vadd.f32 %v140_v34, %v92_v10  ;;  %v68_v20 = vpop.xlane.xlu1 %67 }
  0xb0   :  { %v152_v45 = vadd.f32 %v116_v39, %v68_v20  ;;  %301 = vadd.xlane.f32.xlu2 %v300_v1  ;;  %264 = vadd.xlane.f32.xlu0 %v263_v8  ;;  %v303_v26 = vsel %vm50_vm0, %v279_v36, 0.0  ;;  %v239_v4 = vsel %vm50_vm0, %v215_v38, 0.0 }
  0xb1   :  { %v176_v6 = vmul.f32 0.0625, %v160_v41  ;;  %328 = vadd.xlane.f32.xlu1 %v327_v47 }
  0xb2   :  { %v168_v2 = vmul.f32 0.0625, %v152_v45 }
  0xb3   :  { %v1345_v52 = vsub.f32 %v1140_v37, %v176_v6  ;;  %v1354_v57 = vsub.f32 %v1156_v42, %v176_v6 }
  0xb4   :  { %v1357_v3 = vsub.f32 %v1166_v44, %v168_v2  ;;  %v1363_v9 = vsub.f32 %v1161_v43, %v168_v2 }
  0xb5   :  { %v224_v53 = vmul.f32 %v1345_v52, %v1345_v52  ;;  %v288_v42 = vmul.f32 %v1354_v57, %v1354_v57 }
  0xb6   :  { %v95_v58 = vpop.xlane.xlu0 %94  ;;  %v119_v0 = vpop.xlane.xlu2 %118  ;;  %v216_v44 = vmul.f32 %v1357_v3, %v1357_v3  ;;  %v280_v12 = vmul.f32 %v1363_v9, %v1363_v9 }
  0xb7   :  { %v143_v37 = vpop.xlane.xlu1 %142  ;;  %v266_v24 = vsel %vm50_vm0, %v224_v53, 0.0  ;;  %v330_v14 = vsel %vm50_vm0, %v288_v42, 0.0 }
  0xb8   :  { %v161_v10 = vadd.f32 %v143_v37, %v95_v58  ;;  %304 = vadd.xlane.f32.xlu0 %v303_v26  ;;  %240 = vadd.xlane.f32.xlu2 %v239_v4  ;;  %v242_v32 = vsel %vm50_vm0, %v216_v44, 0.0  ;;  %v306_v39 = vsel %vm50_vm0, %v280_v12, 0.0  ;;  %v914_v44 = vld [vmem:[%s1704_s3 + $0x8] sm:$0xff]  ;;  %v649_v12 = vld [vmem:[%s1704_s3] sm:$0xff] }
  0xb9   :  { %267 = vadd.xlane.f32.xlu1 %v266_v24  ;;  %947 = vmatpush.msra.mxu2 %v914_v44 }
  0xba   :  { %v177_v25 = vmul.f32 0.0625, %v161_v10  ;;  %948 = vmatpush.msra.mxu3 %v649_v12  ;;  %715 = vmatpush.msra.mxu0 %v914_v44 }
  0xbb   :  { %828 = vmatpush.msra.mxu1 %v649_v12 }
  0xbc   :  { %v1373_v43 = vsub.f32 %v1177_v48, %v177_v25  ;;  %v1376_v30 = vsub.f32 %v1187_v50, %v177_v25 }
  0xbe   :  { %v98_v16 = vpop.xlane.xlu2 %97  ;;  %v146_v22 = vpop.xlane.xlu0 %145  ;;  %v289_v20 = vmul.f32 %v1376_v30, %v1376_v30  ;;  %v225_v48 = vmul.f32 %v1373_v43, %v1373_v43 }
  0xbf   :  { %v71_v13 = vpop.xlane.xlu1 %70  ;;  %v162_v33 = vadd.f32 %v146_v22, %v98_v16 }
  0xc0   :  { %v153_v34 = vadd.f32 %v119_v0, %v71_v13  ;;  %331 = vadd.xlane.f32.xlu2 %v330_v14  ;;  %243 = vadd.xlane.f32.xlu0 %v242_v32  ;;  %v333_v36 = vsel %vm50_vm0, %v289_v20, 0.0  ;;  %v269_v38 = vsel %vm50_vm0, %v225_v48, 0.0 }
  0xc1   :  { %307 = vadd.xlane.f32.xlu1 %v306_v39  ;;  %v178_v1 = vmul.f32 0.0625, %v162_v33 }
  0xc2   :  { %v169_v41 = vmul.f32 0.0625, %v153_v34 }
  0xc3   :  { %v1388_v8 = vsub.f32 %v1198_v54, %v178_v1  ;;  %v1391_v45 = vsub.f32 %v1203_v55, %v178_v1 }
  0xc4   :  { %v1385_v50 = vsub.f32 %v1208_v56, %v169_v41  ;;  %v1396_v2 = vsub.f32 %v1182_v49, %v169_v41 }
  0xc5   :  { %v226_v55 = vmul.f32 %v1388_v8, %v1388_v8  ;;  %v290_v0 = vmul.f32 %v1391_v45, %v1391_v45 }
  0xc6   :  { %v217_v47 = vmul.f32 %v1385_v50, %v1385_v50  ;;  %v74_v6 = vpop.xlane.xlu0 %73  ;;  %v281_v49 = vmul.f32 %v1396_v2, %v1396_v2 }
  0xc7   :  { %v122_v53 = vpop.xlane.xlu1 %121  ;;  %v272_v26 = vsel %vm50_vm0, %v226_v55, 0.0  ;;  %v336_v4 = vsel %vm50_vm0, %v290_v0, 0.0 }
  0xc8   :  { %334 = vadd.xlane.f32.xlu0 %v333_v36  ;;  %270 = vadd.xlane.f32.xlu2 %v269_v38  ;;  %v245_v54 = vsel %vm50_vm0, %v217_v47, 0.0  ;;  %v154_v56 = vadd.f32 %v122_v53, %v74_v6  ;;  %v309_v10 = vsel %vm50_vm0, %v281_v49, 0.0 }
  0xc9   :  { %246 = vadd.xlane.f32.xlu1 %v245_v54 }
  0xca   :  { %v170_v58 = vmul.f32 0.0625, %v154_v56 }
  0xcc   :  { %v1408_v37 = vsub.f32 %v1219_v60, %v170_v58  ;;  %v1411_v24 = vsub.f32 %v1224_v61, %v170_v58 }
  0xce   :  { %v282_v42 = vmul.f32 %v1411_v24, %v1411_v24  ;;  %v218_v25 = vmul.f32 %v1408_v37, %v1408_v37 }
  0xd0   :  { %273 = vadd.xlane.f32.xlu0 %v272_v26  ;;  %310 = vadd.xlane.f32.xlu2 %v309_v10  ;;  %v312_v60 = vsel %vm50_vm0, %v282_v42, 0.0  ;;  %v248_v61 = vsel %vm50_vm0, %v218_v25, 0.0  ;;  %v547_v10 = vld [vmem:[%s1705_s1] sm:$0x3] }
  0xd1   :  { %337 = vadd.xlane.f32.xlu1 %v336_v4 }
  0xd8   :  { %313 = vadd.xlane.f32.xlu0 %v312_v60  ;;  %249 = vadd.xlane.f32.xlu2 %v248_v61  ;;  %v548_v60 = vld [vmem:[%s1706_s2] sm:$0x3] }
  0xfb   :  { %v253_v14 = vpop.xlane.xlu2 %252  ;;  %v317_v16 = vpop.xlane.xlu0 %316 }
  0xfc   :  { %v347_v22 = vadd.f32 %v317_v16, %v253_v14  ;;  %v293_v13 = vpop.xlane.xlu1 %292  ;;  %v1441_v16 = vperm.slane %v547_v10, 1 }
  0xfe   :  { %v363_v32 = vmul.f32 0.0625, %v347_v22  ;;  %v1443_v22 = vperm.slane %v547_v10, 0 }
 0x100   :  { %v379_v33 = vadd.f32 1e-05, %v363_v32 }
 0x102   :  { %949 = vrsqrt.f32 %v379_v33  ;;  %vm473_vm2 = vweird.f32 %v379_v33 }
 0x103   :  { %v320_v34 = vpop.xlane.xlu2 %319  ;;  %v229_v39 = vpop.xlane.xlu0 %228 }
 0x104   :  { %v339_v1 = vadd.f32 %v293_v13, %v229_v39  ;;  %v256_v41 = vpop.xlane.xlu1 %255 }
 0x105   :  { %v348_v20 = vadd.f32 %v320_v34, %v256_v41  ;;  %v1447_v41 = vperm.slane %v548_v60, 0 }
 0x106   :  { %v355_v48 = vmul.f32 0.0625, %v339_v1  ;;  %v1445_v1 = vperm.slane %v548_v60, 1 }
 0x107   :  { %v364_v47 = vmul.f32 0.0625, %v348_v20 }
 0x108   :  { %v950_v6 = vpop.eup %949  ;;  %v371_v36 = vadd.f32 1e-05, %v355_v48 }
 0x109   :  { %v468_v38 = vmul.f32 %v950_v6, %v379_v33  ;;  %v1428_v53 = vadd.f32 1e-05, %v364_v47  ;;  %vm474_vm1 = vweird.f32 %v950_v6 }
 0x10a   :  { %951 = vrsqrt.f32 %v371_v36  ;;  %vm475_vm3 = vmor %vm473_vm2, %vm474_vm1  ;;  %vm393_vm6 = vweird.f32 %v371_v36 }
 0x10b   :  { %v469_v54 = vmul.f32 %v950_v6, %v468_v38  ;;  %953 = vrsqrt.f32 %v1428_v53  ;;  %v296_v56 = vpop.xlane.xlu0 %295  ;;  %v232_v55 = vpop.xlane.xlu2 %231  ;;  %vm483_vm8 = vweird.f32 %v1428_v53 }
 0x10c   :  { %v340_v58 = vadd.f32 %v296_v56, %v232_v55  ;;  %v259_v0 = vpop.xlane.xlu1 %258 }
 0x10d   :  { %v470_v49 = vmul.f32 0.5, %v469_v54 }
 0x10e   :  { %v356_v26 = vmul.f32 0.0625, %v340_v58 }
 0x10f   :  { %v471_v4 = vsub.f32 1.5, %v470_v49 }
 0x110   :  { %v952_v42 = vpop.eup %951  ;;  %v1434_v25 = vadd.f32 1e-05, %v356_v26 }
 0x111   :  { %v954_v61 = vpop.eup %953  ;;  %v472_v44 = vmul.f32 %v950_v6, %v471_v4  ;;  %v388_v12 = vmul.f32 %v952_v42, %v371_v36  ;;  %vm394_vm4 = vweird.f32 %v952_v42 }
 0x112   :  { %v478_v14 = vmul.f32 %v954_v61, %v1428_v53  ;;  %955 = vrsqrt.f32 %v1434_v25  ;;  %vm484_vm5 = vweird.f32 %v954_v61  ;;  %vm395_vm7 = vmor %vm393_vm6, %vm394_vm4  ;;  %vm403_vm11 = vweird.f32 %v1434_v25 }
 0x113   :  { %v389_v13 = vmul.f32 %v952_v42, %v388_v12  ;;  %v323_v32 = vpop.xlane.xlu2 %322  ;;  %v235_v34 = vpop.xlane.xlu0 %234  ;;  %v476_v39 = vsel %vm475_vm3, %v950_v6, %v472_v44  ;;  %vm485_vm9 = vmor %vm483_vm8, %vm484_vm5 }
 0x114   :  { %v479_v20 = vmul.f32 %v954_v61, %v478_v14  ;;  %v349_v33 = vadd.f32 %v323_v32, %v259_v0  ;;  %v299_v48 = vpop.xlane.xlu1 %298  ;;  %v607_v47 = vmul.f32 %v476_v39, %v1234_v28  ;;  %v557_v38 = vmul.f32 %v476_v39, %v1231_v27 }
 0x115   :  { %v390_v54 = vmul.f32 0.5, %v389_v13  ;;  %v341_v56 = vadd.f32 %v299_v48, %v235_v34 }
 0x116   :  { %v480_v55 = vmul.f32 0.5, %v479_v20  ;;  %v365_v58 = vmul.f32 0.0625, %v349_v33  ;;  %v624_v49 = vmul.f32 %v1441_v16, %v607_v47  ;;  %v574_v26 = vmul.f32 %v1443_v22, %v557_v38 }
 0x117   :  { %v391_v6 = vsub.f32 1.5, %v390_v54  ;;  %v357_v4 = vmul.f32 0.0625, %v341_v56 }
 0x118   :  { %v956_v10 = vpop.eup %955  ;;  %v481_v60 = vsub.f32 1.5, %v480_v55  ;;  %v1453_v0 = vadd.f32 1e-05, %v365_v58  ;;  %v641_v28 = vadd.f32 %v1445_v1, %v624_v49  ;;  %v591_v27 = vadd.f32 %v1447_v41, %v574_v26 }
 0x119   :  { %v392_v44 = vmul.f32 %v952_v42, %v391_v6  ;;  %v398_v12 = vmul.f32 %v956_v10, %v1434_v25  ;;  %v1458_v14 = vadd.f32 1e-05, %v357_v4  ;;  %vm404_vm10 = vweird.f32 %v956_v10 }
 0x11a   :  { %v482_v13 = vmul.f32 %v954_v61, %v481_v60  ;;  %957 = vrsqrt.f32 %v1453_v0  ;;  %923 = vmatmul.msk.f32.vlgmr.msra.gmra.mxu2 %vm50_vm0, %v641_v28  ;;  %939 = vmatmul.msk.f32.vlgmr.msra.gmra.mxu3 %vm50_vm0, %v591_v27  ;;  %vm405_vm12 = vmor %vm403_vm11, %vm404_vm10  ;;  %vm493_vm15 = vweird.f32 %v1453_v0 }
 0x11b   :  { %v399_v32 = vmul.f32 %v956_v10, %v398_v12  ;;  %959 = vrsqrt.f32 %v1458_v14  ;;  %v326_v36 = vpop.xlane.xlu0 %325  ;;  %v262_v34 = vpop.xlane.xlu2 %261  ;;  %v396_v39 = vsel %vm395_vm7, %v952_v42, %v392_v44  ;;  %vm413_vm2 = vweird.f32 %v1458_v14 }
 0x11c   :  { %v350_v20 = vadd.f32 %v326_v36, %v262_v34  ;;  %v238_v33 = vpop.xlane.xlu1 %237  ;;  %v599_v48 = vmul.f32 %v396_v39, %v1237_v29  ;;  %v486_v47 = vsel %vm485_vm9, %v954_v61, %v482_v13  ;;  %v549_v53 = vmul.f32 %v396_v39, %v1249_v7 }
 0x11d   :  { %v400_v38 = vmul.f32 0.5, %v399_v32  ;;  %v608_v54 = vmul.f32 %v486_v47, %v1244_v35  ;;  %v558_v56 = vmul.f32 %v486_v47, %v1254_v46 }
 0x11e   :  { %v366_v55 = vmul.f32 0.0625, %v350_v20  ;;  %v616_v58 = vmul.f32 %v1441_v16, %v599_v48  ;;  %v566_v49 = vmul.f32 %v1443_v22, %v549_v53 }
 0x11f   :  { %v401_v26 = vsub.f32 1.5, %v400_v38  ;;  %v625_v42 = vmul.f32 %v1441_v16, %v608_v54  ;;  %v575_v6 = vmul.f32 %v1443_v22, %v558_v56 }
 0x120   :  { %v958_v29 = vpop.eup %957  ;;  %v1474_v61 = vadd.f32 1e-05, %v366_v55  ;;  %v633_v7 = vadd.f32 %v1445_v1, %v616_v58  ;;  %v583_v35 = vadd.f32 %v1447_v41, %v566_v49 }
 0x121   :  { %v960_v4 = vpop.eup %959  ;;  %v402_v46 = vmul.f32 %v956_v10, %v401_v26  ;;  %v488_v60 = vmul.f32 %v958_v29, %v1453_v0  ;;  %v642_v28 = vadd.f32 %v1445_v1, %v625_v42  ;;  %v592_v12 = vadd.f32 %v1447_v41, %v575_v6 }
 0x122   :  { %v408_v27 = vmul.f32 %v960_v4, %v1458_v14  ;;  %961 = vrsqrt.f32 %v1474_v61  ;;  %915 = vmatmul.msk.f32.vlgmr.msra.gmra.mxu0 %vm50_vm0, %v633_v7  ;;  %931 = vmatmul.msk.f32.vlgmr.msra.gmra.mxu1 %vm50_vm0, %v583_v35  ;;  %vm494_vm13 = vweird.f32 %v958_v29  ;;  %vm414_vm14 = vweird.f32 %v960_v4 }
 0x123   :  { %v489_v44 = vmul.f32 %v958_v29, %v488_v60  ;;  %924 = vmatmul.msk.f32.gmra.mxu2 %vm50_vm0, %v642_v28  ;;  %v302_v13 = vpop.xlane.xlu2 %301  ;;  %v265_v25 = vpop.xlane.xlu0 %264  ;;  %v406_v32 = vsel %vm405_vm12, %v956_v10, %v402_v46  ;;  %940 = vmatmul.msk.f32.gmra.mxu3 %vm50_vm0, %v592_v12  ;;  %vm495_vm1 = vmor %vm493_vm15, %vm494_vm13  ;;  %vm503_vm5 = vweird.f32 %v1474_v61 }
 0x124   :  { %v409_v36 = vmul.f32 %v960_v4, %v408_v27  ;;  %v342_v34 = vadd.f32 %v302_v13, %v238_v33  ;;  %v329_v39 = vpop.xlane.xlu1 %328  ;;  %v600_v20 = vmul.f32 %v406_v32, %v1268_v62  ;;  %v550_v48 = vmul.f32 %v406_v32, %v1265_v59  ;;  %vm415_vm3 = vmor %vm413_vm2, %vm414_vm14 }
 0x125   :  { %v490_v47 = vmul.f32 0.5, %v489_v44  ;;  %v351_v53 = vadd.f32 %v329_v39, %v265_v25 }
 0x126   :  { %v410_v38 = vmul.f32 0.5, %v409_v36  ;;  %v358_v54 = vmul.f32 0.0625, %v342_v34  ;;  %v617_v56 = vmul.f32 %v1441_v16, %v600_v20  ;;  %v567_v55 = vmul.f32 %v1443_v22, %v550_v48 }
 0x127   :  { %v491_v58 = vsub.f32 1.5, %v490_v47  ;;  %v367_v10 = vmul.f32 0.0625, %v351_v53 }
 0x128   :  { %v962_v33 = vpop.eup %961  ;;  %v411_v49 = vsub.f32 1.5, %v410_v38  ;;  %v1492_v26 = vadd.f32 1e-05, %v358_v54  ;;  %v634_v59 = vadd.f32 %v1445_v1, %v617_v56  ;;  %v584_v62 = vadd.f32 %v1447_v41, %v567_v55 }
 0x129   :  { %v492_v42 = vmul.f32 %v958_v29, %v491_v58  ;;  %v498_v6 = vmul.f32 %v962_v33, %v1474_v61  ;;  %v1498_v7 = vadd.f32 1e-05, %v367_v10  ;;  %vm504_vm4 = vweird.f32 %v962_v33 }
 0x12a   :  { %v412_v35 = vmul.f32 %v960_v4, %v411_v49  ;;  %963 = vrsqrt.f32 %v1492_v26  ;;  %916 = vmatmul.msk.f32.gmra.mxu0 %vm50_vm0, %v634_v59  ;;  %932 = vmatmul.msk.f32.gmra.mxu1 %vm50_vm0, %v584_v62  ;;  %vm505_vm6 = vmor %vm503_vm5, %vm504_vm4  ;;  %vm423_vm9 = vweird.f32 %v1492_v26 }
 0x12b   :  { %v499_v46 = vmul.f32 %v962_v33, %v498_v6  ;;  %965 = vrsqrt.f32 %v1498_v7  ;;  %v305_v0 = vpop.xlane.xlu0 %304  ;;  %v241_v60 = vpop.xlane.xlu2 %240  ;;  %v496_v28 = vsel %vm495_vm1, %v958_v29, %v492_v42  ;;  %vm513_vm11 = vweird.f32 %v1498_v7 }
 0x12c   :  { %v343_v27 = vadd.f32 %v305_v0, %v241_v60  ;;  %v268_v44 = vpop.xlane.xlu1 %267  ;;  %v416_v12 = vsel %vm415_vm3, %v960_v4, %v412_v35  ;;  %v609_v13 = vmul.f32 %v496_v28, %v1282_v17  ;;  %v559_v14 = vmul.f32 %v496_v28, %v1273_v11 }
 0x12d   :  { %v500_v25 = vmul.f32 0.5, %v499_v46  ;;  %v601_v32 = vmul.f32 %v416_v12, %v1291_v40  ;;  %v551_v36 = vmul.f32 %v416_v12, %v1285_v23 }
 0x12e   :  { %v359_v34 = vmul.f32 0.0625, %v343_v27  ;;  %v626_v39 = vmul.f32 %v1441_v16, %v609_v13  ;;  %v576_v20 = vmul.f32 %v1443_v22, %v559_v14 }
 0x12f   :  { %v501_v48 = vsub.f32 1.5, %v500_v25  ;;  %v618_v29 = vmul.f32 %v1441_v16, %v601_v32  ;;  %v568_v4 = vmul.f32 %v1443_v22, %v551_v36 }
 0x130   :  { %v964_v47 = vpop.eup %963  ;;  %v1514_v17 = vadd.f32 1e-05, %v359_v34  ;;  %v643_v11 = vadd.f32 %v1445_v1, %v626_v39  ;;  %v593_v40 = vadd.f32 %v1447_v41, %v576_v20 }
 0x131   :  { %v966_v53 = vpop.eup %965  ;;  %v502_v23 = vmul.f32 %v962_v33, %v501_v48  ;;  %v418_v38 = vmul.f32 %v964_v47, %v1492_v26  ;;  %v635_v54 = vadd.f32 %v1445_v1, %v618_v29  ;;  %v585_v58 = vadd.f32 %v1447_v41, %v568_v4 }
 0x132   :  { %v508_v56 = vmul.f32 %v966_v53, %v1498_v7  ;;  %967 = vrsqrt.f32 %v1514_v17  ;;  %925 = vmatmul.msk.f32.gmra.mxu2 %vm50_vm0, %v643_v11  ;;  %941 = vmatmul.msk.f32.gmra.mxu3 %vm50_vm0, %v593_v40  ;;  %vm424_vm7 = vweird.f32 %v964_v47  ;;  %vm514_vm8 = vweird.f32 %v966_v53 }
 0x133   :  { %v419_v55 = vmul.f32 %v964_v47, %v418_v38  ;;  %917 = vmatmul.msk.f32.gmra.mxu0 %vm50_vm0, %v635_v54  ;;  %v332_v10 = vpop.xlane.xlu2 %331  ;;  %v244_v61 = vpop.xlane.xlu0 %243  ;;  %v506_v49 = vsel %vm505_vm6, %v962_v33, %v502_v23  ;;  %933 = vmatmul.msk.f32.gmra.mxu1 %vm50_vm0, %v585_v58  ;;  %vm425_vm10 = vmor %vm423_vm9, %vm424_vm7  ;;  %vm433_vm14 = vweird.f32 %v1514_v17 }
 0x134   :  { %v509_v59 = vmul.f32 %v966_v53, %v508_v56  ;;  %v352_v62 = vadd.f32 %v332_v10, %v268_v44  ;;  %v308_v42 = vpop.xlane.xlu1 %307  ;;  %v610_v6 = vmul.f32 %v506_v49, %v1304_v51  ;;  %v560_v35 = vmul.f32 %v506_v49, %v1301_v19  ;;  %vm515_vm12 = vmor %vm513_vm11, %vm514_vm8 }
 0x135   :  { %v420_v46 = vmul.f32 0.5, %v419_v55  ;;  %v344_v0 = vadd.f32 %v308_v42, %v244_v61 }
 0x136   :  { %v510_v60 = vmul.f32 0.5, %v509_v59  ;;  %v368_v28 = vmul.f32 0.0625, %v352_v62  ;;  %v627_v27 = vmul.f32 %v1441_v16, %v610_v6  ;;  %v577_v12 = vmul.f32 %v1443_v22, %v560_v35 }
 0x137   :  { %v421_v13 = vsub.f32 1.5, %v420_v46  ;;  %v360_v33 = vmul.f32 0.0625, %v344_v0 }
 0x138   :  { %v968_v44 = vpop.eup %967  ;;  %v511_v14 = vsub.f32 1.5, %v510_v60  ;;  %v1532_v25 = vadd.f32 1e-05, %v368_v28  ;;  %v644_v19 = vadd.f32 %v1445_v1, %v627_v27  ;;  %v594_v51 = vadd.f32 %v1447_v41, %v577_v12 }
 0x139   :  { %v422_v32 = vmul.f32 %v964_v47, %v421_v13  ;;  %v428_v36 = vmul.f32 %v968_v44, %v1514_v17  ;;  %v1538_v34 = vadd.f32 1e-05, %v360_v33  ;;  %vm434_vm13 = vweird.f32 %v968_v44 }
 0x13a   :  { %v512_v39 = vmul.f32 %v966_v53, %v511_v14  ;;  %969 = vrsqrt.f32 %v1532_v25  ;;  %926 = vmatmul.msk.f32.gmra.mxu2 %vm50_vm0, %v644_v19  ;;  %942 = vmatmul.msk.f32.gmra.mxu3 %vm50_vm0, %v594_v51  ;;  %vm435_vm15 = vmor %vm433_vm14, %vm434_vm13  ;;  %vm523_vm3 = vweird.f32 %v1532_v25 }
 0x13b   :  { %v429_v20 = vmul.f32 %v968_v44, %v428_v36  ;;  %971 = vrsqrt.f32 %v1538_v34  ;;  %v335_v26 = vpop.xlane.xlu0 %334  ;;  %v271_v48 = vpop.xlane.xlu2 %270  ;;  %v426_v29 = vsel %vm425_vm10, %v964_v47, %v422_v32  ;;  %vm443_vm5 = vweird.f32 %v1538_v34 }
 0x13c   :  { %v353_v4 = vadd.f32 %v335_v26, %v271_v48  ;;  %v247_v11 = vpop.xlane.xlu1 %246  ;;  %v602_v40 = vmul.f32 %v426_v29, %v1318_v5  ;;  %v516_v23 = vsel %vm515_vm12, %v966_v53, %v512_v39  ;;  %v552_v7 = vmul.f32 %v426_v29, %v1309_v63 }
 0x13d   :  { %v430_v38 = vmul.f32 0.5, %v429_v20  ;;  %v611_v54 = vmul.f32 %v516_v23, %v1327_v21  ;;  %v561_v56 = vmul.f32 %v516_v23, %v1321_v15 }
 0x13e   :  { %v369_v55 = vmul.f32 0.0625, %v353_v4  ;;  %v619_v58 = vmul.f32 %v1441_v16, %v602_v40  ;;  %v569_v10 = vmul.f32 %v1443_v22, %v552_v7 }
 0x13f   :  { %v431_v61 = vsub.f32 1.5, %v430_v38  ;;  %v628_v47 = vmul.f32 %v1441_v16, %v611_v54  ;;  %v578_v49 = vmul.f32 %v1443_v22, %v561_v56 }
 0x140   :  { %v970_v5 = vpop.eup %969  ;;  %v1554_v53 = vadd.f32 1e-05, %v369_v55  ;;  %v636_v63 = vadd.f32 %v1445_v1, %v619_v58  ;;  %v586_v21 = vadd.f32 %v1447_v41, %v569_v10 }
 0x141   :  { %v972_v59 = vpop.eup %971  ;;  %v432_v15 = vmul.f32 %v968_v44, %v431_v61  ;;  %v518_v62 = vmul.f32 %v970_v5, %v1532_v25  ;;  %v645_v42 = vadd.f32 %v1445_v1, %v628_v47  ;;  %v595_v46 = vadd.f32 %v1447_v41, %v578_v49 }
 0x142   :  { %v438_v6 = vmul.f32 %v972_v59, %v1538_v34  ;;  %973 = vrsqrt.f32 %v1554_v53  ;;  %918 = vmatmul.msk.f32.gmra.mxu0 %vm50_vm0, %v636_v63  ;;  %934 = vmatmul.msk.f32.gmra.mxu1 %vm50_vm0, %v586_v21  ;;  %vm524_vm1 = vweird.f32 %v970_v5  ;;  %vm444_vm2 = vweird.f32 %v972_v59 }
 0x143   :  { %v519_v35 = vmul.f32 %v970_v5, %v518_v62  ;;  %927 = vmatmul.msk.f32.gmra.mxu2 %vm50_vm0, %v645_v42  ;;  %v274_v0 = vpop.xlane.xlu0 %273  ;;  %v311_v17 = vpop.xlane.xlu2 %310  ;;  %v436_v60 = vsel %vm435_vm15, %v968_v44, %v432_v15  ;;  %943 = vmatmul.msk.f32.gmra.mxu3 %vm50_vm0, %v595_v46  ;;  %vm525_vm4 = vmor %vm523_vm3, %vm524_vm1  ;;  %vm533_vm8 = vweird.f32 %v1554_v53 }
 0x144   :  { %v439_v28 = vmul.f32 %v972_v59, %v438_v6  ;;  %v345_v27 = vadd.f32 %v311_v17, %v247_v11  ;;  %v338_v12 = vpop.xlane.xlu1 %337  ;;  %v603_v13 = vmul.f32 %v436_v60, %v1340_v18  ;;  %v553_v33 = vmul.f32 %v436_v60, %v1337_v31  ;;  %vm445_vm6 = vmor %vm443_vm5, %vm444_vm2 }
 0x145   :  { %v520_v14 = vmul.f32 0.5, %v519_v35  ;;  %v354_v19 = vadd.f32 %v338_v12, %v274_v0 }
 0x146   :  { %v440_v51 = vmul.f32 0.5, %v439_v28  ;;  %v361_v32 = vmul.f32 0.0625, %v345_v27  ;;  %v620_v36 = vmul.f32 %v1441_v16, %v603_v13  ;;  %v570_v39 = vmul.f32 %v1443_v22, %v553_v33 }
 0x147   :  { %v521_v20 = vsub.f32 1.5, %v520_v14  ;;  %v370_v44 = vmul.f32 0.0625, %v354_v19 }
 0x148   :  { %v974_v26 = vpop.eup %973  ;;  %v441_v48 = vsub.f32 1.5, %v440_v51  ;;  %v1572_v29 = vadd.f32 1e-05, %v361_v32  ;;  %v637_v31 = vadd.f32 %v1445_v1, %v620_v36  ;;  %v587_v18 = vadd.f32 %v1447_v41, %v570_v39 }
 0x149   :  { %v522_v4 = vmul.f32 %v970_v5, %v521_v20  ;;  %v528_v11 = vmul.f32 %v974_v26, %v1554_v53  ;;  %v1578_v40 = vadd.f32 1e-05, %v370_v44  ;;  %vm534_vm7 = vweird.f32 %v974_v26 }
 0x14a   :  { %v442_v23 = vmul.f32 %v972_v59, %v441_v48  ;;  %975 = vrsqrt.f32 %v1572_v29  ;;  %919 = vmatmul.msk.f32.gmra.mxu0 %vm50_vm0, %v637_v31  ;;  %935 = vmatmul.msk.f32.gmra.mxu1 %vm50_vm0, %v587_v18  ;;  %vm535_vm9 = vmor %vm533_vm8, %vm534_vm7  ;;  %vm453_vm12 = vweird.f32 %v1572_v29 }
 0x14b   :  { %v529_v7 = vmul.f32 %v974_v26, %v528_v11  ;;  %977 = vrsqrt.f32 %v1578_v40  ;;  %v314_v25 = vpop.xlane.xlu0 %313  ;;  %v250_v38 = vpop.xlane.xlu2 %249  ;;  %v526_v54 = vsel %vm525_vm4, %v970_v5, %v522_v4  ;;  %vm543_vm14 = vweird.f32 %v1578_v40 }
 0x14c   :  { %v346_v56 = vadd.f32 %v314_v25, %v250_v38  ;;  %v446_v55 = vsel %vm445_vm6, %v972_v59, %v442_v23  ;;  %v612_v58 = vmul.f32 %v526_v54, %v1354_v57  ;;  %v562_v34 = vmul.f32 %v526_v54, %v1345_v52 }
 0x14d   :  { %v530_v10 = vmul.f32 0.5, %v529_v7  ;;  %v604_v61 = vmul.f32 %v446_v55, %v1363_v9  ;;  %v554_v47 = vmul.f32 %v446_v55, %v1357_v3 }
 0x14e   :  { %v362_v49 = vmul.f32 0.0625, %v346_v56  ;;  %v629_v63 = vmul.f32 %v1441_v16, %v612_v58  ;;  %v579_v21 = vmul.f32 %v1443_v22, %v562_v34 }
 0x14f   :  { %v531_v15 = vsub.f32 1.5, %v530_v10  ;;  %v621_v5 = vmul.f32 %v1441_v16, %v604_v61  ;;  %v571_v59 = vmul.f32 %v1443_v22, %v554_v47 }
 0x150   :  { %v976_v62 = vpop.eup %975  ;;  %v378_v57 = vadd.f32 1e-05, %v362_v49  ;;  %v646_v52 = vadd.f32 %v1445_v1, %v629_v63  ;;  %v596_v42 = vadd.f32 %v1447_v41, %v579_v21 }
 0x151   :  { %v978_v9 = vpop.eup %977  ;;  %v532_v6 = vmul.f32 %v974_v26, %v531_v15  ;;  %v448_v3 = vmul.f32 %v976_v62, %v1572_v29  ;;  %v638_v35 = vadd.f32 %v1445_v1, %v621_v5  ;;  %v588_v17 = vadd.f32 %v1447_v41, %v571_v59 }
 0x152   :  { %v538_v46 = vmul.f32 %v978_v9, %v1578_v40  ;;  %979 = vrsqrt.f32 %v378_v57  ;;  %928 = vmatmul.msk.f32.gmra.mxu2 %vm50_vm0, %v646_v52  ;;  %944 = vmatmul.msk.f32.gmra.mxu3 %vm50_vm0, %v596_v42  ;;  %vm454_vm10 = vweird.f32 %v976_v62  ;;  %vm544_vm11 = vweird.f32 %v978_v9 }
 0x153   :  { %v449_v0 = vmul.f32 %v976_v62, %v448_v3  ;;  %920 = vmatmul.msk.f32.gmra.mxu0 %vm50_vm0, %v638_v35  ;;  %v536_v60 = vsel %vm535_vm9, %v974_v26, %v532_v6  ;;  %936 = vmatmul.msk.f32.gmra.mxu1 %vm50_vm0, %v588_v17  ;;  %vm455_vm13 = vmor %vm453_vm12, %vm454_vm10  ;;  %vm463_vm2 = vweird.f32 %v378_v57 }
 0x154   :  { %v539_v28 = vmul.f32 %v978_v9, %v538_v46  ;;  %v613_v53 = vmul.f32 %v536_v60, %v1376_v30  ;;  %v563_v27 = vmul.f32 %v536_v60, %v1373_v43  ;;  %vm545_vm15 = vmor %vm543_vm14, %vm544_vm11 }
 0x155   :  { %v450_v12 = vmul.f32 0.5, %v449_v0 }
 0x156   :  { %v540_v13 = vmul.f32 0.5, %v539_v28  ;;  %v630_v33 = vmul.f32 %v1441_v16, %v613_v53  ;;  %v580_v14 = vmul.f32 %v1443_v22, %v563_v27 }
 0x157   :  { %v451_v19 = vsub.f32 1.5, %v450_v12 }
 0x158   :  { %v980_v51 = vpop.eup %979  ;;  %v541_v32 = vsub.f32 1.5, %v540_v13  ;;  %v647_v36 = vadd.f32 %v1445_v1, %v630_v33  ;;  %v597_v39 = vadd.f32 %v1447_v41, %v580_v14 }
 0x159   :  { %v452_v30 = vmul.f32 %v976_v62, %v451_v19  ;;  %v458_v43 = vmul.f32 %v980_v51, %v378_v57  ;;  %vm464_vm1 = vweird.f32 %v980_v51 }
 0x15a   :  { %v542_v20 = vmul.f32 %v978_v9, %v541_v32  ;;  %929 = vmatmul.msk.f32.gmra.mxu2 %vm50_vm0, %v647_v36  ;;  %945 = vmatmul.msk.f32.gmra.mxu3 %vm50_vm0, %v597_v39  ;;  %vm465_vm3 = vmor %vm463_vm2, %vm464_vm1 }
 0x15b   :  { %v459_v44 = vmul.f32 %v980_v51, %v458_v43  ;;  %v456_v26 = vsel %vm455_vm13, %v976_v62, %v452_v30 }
 0x15c   :  { %v605_v48 = vmul.f32 %v456_v26, %v1396_v2  ;;  %v546_v31 = vsel %vm545_vm15, %v978_v9, %v542_v20  ;;  %v555_v18 = vmul.f32 %v456_v26, %v1385_v50 }
 0x15d   :  { %v460_v4 = vmul.f32 0.5, %v459_v44  ;;  %v614_v29 = vmul.f32 %v546_v31, %v1391_v45  ;;  %v564_v11 = vmul.f32 %v546_v31, %v1388_v8 }
 0x15e   :  { %v622_v23 = vmul.f32 %v1441_v16, %v605_v48  ;;  %v572_v40 = vmul.f32 %v1443_v22, %v555_v18 }
 0x15f   :  { %v461_v7 = vsub.f32 1.5, %v460_v4  ;;  %v631_v25 = vmul.f32 %v1441_v16, %v614_v29  ;;  %v581_v38 = vmul.f32 %v1443_v22, %v564_v11 }
 0x160   :  { %v639_v2 = vadd.f32 %v1445_v1, %v622_v23  ;;  %v589_v54 = vadd.f32 %v1447_v41, %v572_v40 }
 0x161   :  { %v462_v50 = vmul.f32 %v980_v51, %v461_v7  ;;  %v648_v45 = vadd.f32 %v1445_v1, %v631_v25  ;;  %v598_v8 = vadd.f32 %v1447_v41, %v581_v38 }
 0x162   :  { %921 = vmatmul.msk.f32.gmra.mxu0 %vm50_vm0, %v639_v2  ;;  %937 = vmatmul.msk.f32.gmra.mxu1 %vm50_vm0, %v589_v54 }
 0x163   :  { %930 = vmatmul.msk.f32.gmra.mxu2 %vm50_vm0, %v648_v45  ;;  %946 = vmatmul.msk.f32.gmra.mxu3 %vm50_vm0, %v598_v8  ;;  %v466_v56 = vsel %vm465_vm3, %v980_v51, %v462_v50 }
 0x164   :  { %v606_v55 = vmul.f32 %v466_v56, %v1411_v24  ;;  %v556_v58 = vmul.f32 %v466_v56, %v1408_v37 }
 0x166   :  { %v623_v34 = vmul.f32 %v1441_v16, %v606_v55  ;;  %v573_v10 = vmul.f32 %v1443_v22, %v556_v58 }
 0x168   :  { %v640_v61 = vadd.f32 %v1445_v1, %v623_v34  ;;  %v590_v47 = vadd.f32 %v1447_v41, %v573_v10 }
 0x16a   :  { %922 = vmatmul.msk.f32.gmra.mxu0 %vm50_vm0, %v640_v61  ;;  %938 = vmatmul.msk.f32.gmra.mxu1 %vm50_vm0, %v590_v47 }
 0x19d   :  { %v741_v49 = vpop.f32.mrf.mxu2  ;;  %v854_v63 = vpop.f32.mrf.mxu3 }
 0x19e   :  { %v855_v21 = vadd.f32 %v854_v63, %v741_v49 }
 0x19f   :  { %v717_v15 = vpop.f32.mrf.mxu0  ;;  %v830_v5 = vpop.f32.mrf.mxu1 }
 0x1a0   :  { %886 = vst.msk [vmem:[%s1707_s4 + $0x40] sm:$0xff] %vm50_vm0, %v855_v21  ;;  %v831_v37 = vadd.f32 %v830_v5, %v717_v15 }
 0x1a2   :  { %878 = vst.msk [vmem:[%s1707_s4] sm:$0xff] %vm50_vm0, %v831_v37 }
 0x1a6   :  { %v744_v24 = vpop.f32.mrf.mxu2  ;;  %v857_v1 = vpop.f32.mrf.mxu3 }
 0x1a7   :  { %v720_v16 = vpop.f32.mrf.mxu0  ;;  %v833_v22 = vpop.f32.mrf.mxu1  ;;  %v858_v59 = vadd.f32 %v857_v1, %v744_v24 }
 0x1a8   :  { %v834_v41 = vadd.f32 %v833_v22, %v720_v16 }
 0x1a9   :  { %887 = vst.msk [vmem:[%s1707_s4 + $0x48] sm:$0xff] %vm50_vm0, %v858_v59 }
 0x1aa   :  { %879 = vst.msk [vmem:[%s1707_s4 + $0x8] sm:$0xff] %vm50_vm0, %v834_v41 }
 0x1b0   :  { %v723_v62 = vpop.f32.mrf.mxu0  ;;  %v836_v57 = vpop.f32.mrf.mxu1 }
 0x1b1   :  { %v837_v52 = vadd.f32 %v836_v57, %v723_v62 }
 0x1b3   :  { %880 = vst.msk [vmem:[%s1707_s4 + $0x10] sm:$0xff] %vm50_vm0, %v837_v52 }
 0x1b5   :  { %v747_v42 = vpop.f32.mrf.mxu2  ;;  %v860_v9 = vpop.f32.mrf.mxu3 }
 0x1b6   :  { %v861_v6 = vadd.f32 %v860_v9, %v747_v42 }
 0x1b8   :  { %888 = vst.msk [vmem:[%s1707_s4 + $0x50] sm:$0xff] %vm50_vm0, %v861_v6 }
 0x1bd   :  { %v750_v3 = vpop.f32.mrf.mxu2  ;;  %v863_v35 = vpop.f32.mrf.mxu3 }
 0x1be   :  { %v864_v46 = vadd.f32 %v863_v35, %v750_v3 }
 0x1bf   :  { %v726_v0 = vpop.f32.mrf.mxu0  ;;  %v839_v17 = vpop.f32.mrf.mxu1 }
 0x1c0   :  { %889 = vst.msk [vmem:[%s1707_s4 + $0x58] sm:$0xff] %vm50_vm0, %v864_v46  ;;  %v840_v60 = vadd.f32 %v839_v17, %v726_v0 }
 0x1c2   :  { %881 = vst.msk [vmem:[%s1707_s4 + $0x18] sm:$0xff] %vm50_vm0, %v840_v60 }
 0x1c6   :  { %v753_v28 = vpop.f32.mrf.mxu2  ;;  %v866_v12 = vpop.f32.mrf.mxu3 }
 0x1c7   :  { %v729_v53 = vpop.f32.mrf.mxu0  ;;  %v842_v27 = vpop.f32.mrf.mxu1  ;;  %v867_v33 = vadd.f32 %v866_v12, %v753_v28 }
 0x1c8   :  { %v843_v13 = vadd.f32 %v842_v27, %v729_v53 }
 0x1c9   :  { %890 = vst.msk [vmem:[%s1707_s4 + $0x60] sm:$0xff] %vm50_vm0, %v867_v33 }
 0x1ca   :  { %882 = vst.msk [vmem:[%s1707_s4 + $0x20] sm:$0xff] %vm50_vm0, %v843_v13 }
 0x1d0   :  { %v732_v14 = vpop.f32.mrf.mxu0  ;;  %v845_v19 = vpop.f32.mrf.mxu1 }
 0x1d1   :  { %v846_v51 = vadd.f32 %v845_v19, %v732_v14 }
 0x1d3   :  { %883 = vst.msk [vmem:[%s1707_s4 + $0x28] sm:$0xff] %vm50_vm0, %v846_v51 }
 0x1d5   :  { %v756_v32 = vpop.f32.mrf.mxu2  ;;  %v869_v36 = vpop.f32.mrf.mxu3 }
 0x1d6   :  { %v870_v39 = vadd.f32 %v869_v36, %v756_v32 }
 0x1d8   :  { %891 = vst.msk [vmem:[%s1707_s4 + $0x68] sm:$0xff] %vm50_vm0, %v870_v39 }
 0x1dd   :  { %v759_v30 = vpop.f32.mrf.mxu2  ;;  %v872_v43 = vpop.f32.mrf.mxu3 }
 0x1de   :  { %v873_v20 = vadd.f32 %v872_v43, %v759_v30 }
 0x1df   :  { %v735_v44 = vpop.f32.mrf.mxu0  ;;  %v848_v26 = vpop.f32.mrf.mxu1 }
 0x1e0   :  { %892 = vst.msk [vmem:[%s1707_s4 + $0x70] sm:$0xff] %vm50_vm0, %v873_v20  ;;  %v849_v48 = vadd.f32 %v848_v26, %v735_v44 }
 0x1e2   :  { %884 = vst.msk [vmem:[%s1707_s4 + $0x30] sm:$0xff] %vm50_vm0, %v849_v48 }
 0x1e6   :  { %v762_v31 = vpop.f32.mrf.mxu2  ;;  %v875_v18 = vpop.f32.mrf.mxu3 }
 0x1e7   :  { %v876_v4 = vadd.f32 %v875_v18, %v762_v31  ;;  %v738_v29 = vpop.f32.mrf.mxu0  ;;  %v851_v11 = vpop.f32.mrf.mxu1 }
 0x1e8   :  { %v852_v23 = vadd.f32 %v851_v11, %v738_v29 }
 0x1e9   :  { %893 = vst.msk [vmem:[%s1707_s4 + $0x78] sm:$0xff] %vm50_vm0, %v876_v4 }
 0x1ea   :  { %885 = vst.msk [vmem:[%s1707_s4 + $0x38] sm:$0xff] %vm50_vm0, %v852_v23 }

</bundles_post_ra>
